<compile_context>
chip_gen: v5e
topology: v5e:2x2
jax: 0.10.0
libtpu: 0.0.40
codegen_flags: <defaults>
</compile_context>

<pallas_src>
import jax
import jax.numpy as jnp
from jax.experimental import pallas as pl
from jax.experimental.pallas import tpu as pltpu


def _attnpool_kernel(x_ref, poskv_sp_ref, posq_ref, poskvm_ref, wq_ref, wkv_ref,
                     wc_ref, bc_ref, seg_ref, segt_ref, smat_ref, smatt_ref,
                     o_ref):
    """One batch tile: (Bt*HW, C) spatial rows -> (Bt, Dout_pad) pooled outputs."""
    f32, bf16 = jnp.float32, jnp.bfloat16
    BtHW, C = x_ref.shape
    Bt = smat_ref.shape[0]
    HW = BtHW // Bt
    H = seg_ref.shape[1]

    x = x_ref[...]                                   # (Bt*HW, C) bf16
    smat = smat_ref[...]                             # (Bt, Bt*HW) bf16 0/1 batch segments
    wkv = wkv_ref[...]                               # (C, 2C) bf16 [Wk | Wv]

    # ---- mean token per image: one tiny MXU pass (no concat / reshape of big tiles) ----
    means = jnp.dot(smat, x, preferred_element_type=f32) * (1.0 / HW)         # (Bt, C)
    means_bf = means.astype(bf16)

    # ---- q / k / v for the mean token (the query exists ONLY for this token) ----
    q = jnp.dot(means_bf, wq_ref[...], preferred_element_type=f32) + posq_ref[...]       # (Bt, C)
    kv_m = jnp.dot(means_bf, wkv, preferred_element_type=f32) + poskvm_ref[...]          # (Bt, 2C)
    k_m, v_m = kv_m[:, :C], kv_m[:, C:]

    # ---- k / v for the spatial tokens: one tall matmul, pos/bias slab added after ----
    kv_sp = jnp.dot(x, wkv, preferred_element_type=f32) + poskv_sp_ref[...]              # (Bt*HW, 2C)
    k_sp, v_sp = kv_sp[:, :C], kv_sp[:, C:]

    # ---- per-head scores: q*k elementwise, summed per head via the (C,H) 0/1 matmul ----
    q_rows = jnp.dot(smatt_ref[...], q.astype(bf16), preferred_element_type=f32)          # (Bt*HW, C)
    seg = seg_ref[...]                                                                     # (C, H) bf16
    s_sp = jnp.dot((q_rows * k_sp).astype(bf16), seg,
                   preferred_element_type=f32).reshape(Bt, HW, H)                          # (Bt, HW, H)
    s_m = jnp.dot((q * k_m).astype(bf16), seg, preferred_element_type=f32)                 # (Bt, H)

    # ---- softmax over the HW+1 keys (mean token handled separately; no padding) ----
    m = jnp.maximum(jnp.max(s_sp, axis=1), s_m)                                            # (Bt, H)
    p_sp = jnp.exp(s_sp - m[:, None, :])                                                   # (Bt, HW, H)
    p_m = jnp.exp(s_m - m)                                                                 # (Bt, H)
    inv = pl.reciprocal(jnp.sum(p_sp, axis=1) + p_m, approx=True)                          # (Bt, H)
    p_sp = p_sp * inv[:, None, :]
    p_m = p_m * inv

    # ---- weighted value sum: expand per-head probs to channels, reduce per image ----
    segt = segt_ref[...]                                                                   # (H, C) bf16
    p_sp_c = jnp.dot(p_sp.reshape(BtHW, H).astype(bf16), segt,
                     preferred_element_type=f32)                                           # (Bt*HW, C)
    attn = jnp.dot(smat, (p_sp_c * v_sp).astype(bf16), preferred_element_type=f32)         # (Bt, C)
    attn = attn + jnp.dot(p_m.astype(bf16), segt, preferred_element_type=f32) * v_m

    # ---- output projection (c_proj) ----
    o_ref[...] = jnp.dot(attn.astype(bf16), wc_ref[...],
                         preferred_element_type=f32) + bc_ref[...]


def attention_pool2d(x_nchw, params, num_heads, *, batch_tile=8, vmem_limit_mb=56):
    """Pallas forward of AttentionPool2d.  x_nchw: (N, C, H, W) float32.

    Defaults are sized to fit v7x (64 MiB VMEM / TensorCore).  On v6e / v5e
    (128 MiB VMEM) prefer batch_tile=16..32 (and a larger vmem_limit_mb) to
    amortise per-grid-step overhead.
    """
    N, C, Himg, Wimg = x_nchw.shape
    HW = Himg * Wimg
    H = num_heads
    assert C % H == 0, "embed_dim must be divisible by num_heads"
    d = C // H
    scale = 1.0 / float(d) ** 0.5
    Dout = params["wc"].shape[0]
    Dout_pad = pl.cdiv(Dout, 128) * 128               # lane-dense output stores

    # ---- batch tile: 8-aligned; keep >= 2 grid steps when possible (v7x has 2 TCs) ----
    Bt = max(8, (batch_tile // 8) * 8)
    if N > 8:
        Bt = min(Bt, 8 * pl.cdiv(pl.cdiv(N, 2), 8))
    N_pad = pl.cdiv(N, Bt) * Bt

    # ---- activations: NCHW -> (N_pad*HW, C) channels-last rows, bf16 (halves DMA) ----
    x_rows = jnp.transpose(x_nchw.reshape(N, C, HW), (0, 2, 1)).astype(jnp.bfloat16)
    if N_pad != N:
        x_rows = jnp.pad(x_rows, ((0, N_pad - N), (0, 0), (0, 0)))
    x_rows = x_rows.reshape(N_pad * HW, C)

    # ---- weights: pre-transposed bf16; 1/sqrt(head_dim) folded into the q projection ----
    wkv_f32 = jnp.concatenate([params["wk"].T, params["wv"].T], axis=1).astype(jnp.float32)  # (C, 2C)
    wq = (params["wq"].T * scale).astype(jnp.bfloat16)                                       # (C, C)
    wkv = wkv_f32.astype(jnp.bfloat16)
    wc = params["wc"].T.astype(jnp.float32)                                                  # (C, Dout)
    bc = params["bc"].reshape(1, Dout).astype(jnp.float32)
    if Dout_pad != Dout:
        wc = jnp.pad(wc, ((0, 0), (0, Dout_pad - Dout)))
        bc = jnp.pad(bc, ((0, 0), (0, Dout_pad - Dout)))
    wc = wc.astype(jnp.bfloat16)

    # ---- positional embedding / biases pushed through the projections (linearity) ----
    pos = params["pos"].astype(jnp.float32)                                                  # (HW+1, C)
    bkv = jnp.concatenate([params["bk"], params["bv"]]).reshape(1, 2 * C).astype(jnp.float32)
    pos_kv = pos @ wkv_f32 + bkv                                                             # (HW+1, 2C)
    posq_m = (pos[0:1] @ params["wq"].T.astype(jnp.float32)) * scale \
        + params["bq"].reshape(1, C).astype(jnp.float32) * scale                             # (1, C)
    poskv_m = pos_kv[0:1]                                                                    # (1, 2C)
    poskv_sp = jnp.tile(pos_kv[1:], (Bt, 1))                                                 # (Bt*HW, 2C)

    # ---- constant 0/1 segment matrices (hoisted out of the kernel, bf16) ----
    head_of = jnp.arange(C, dtype=jnp.int32) // d
    seg = (head_of[:, None] == jnp.arange(H, dtype=jnp.int32)[None, :]).astype(jnp.bfloat16)   # (C, H)
    segt = seg.T                                                                               # (H, C)
    img_of = jnp.arange(Bt * HW, dtype=jnp.int32) // HW
    smat = (jnp.arange(Bt, dtype=jnp.int32)[:, None] == img_of[None, :]).astype(jnp.bfloat16)  # (Bt, Bt*HW)
    smat_t = smat.T                                                                            # (Bt*HW, Bt)

    def const_spec(shape, single_buffer):
        nd = len(shape)
        if single_buffer:
            # Single-buffer the grid-invariant operands (weights, pos slabs, segment
            # matrices) -- halves their VMEM footprint vs. default double buffering.
            return pl.BlockSpec(shape, lambda n: (0,) * nd, pipeline_mode=pl.Buffered(1))
        return pl.BlockSpec(shape, lambda n: (0,) * nd)

    def run(single_buffer):
        cs = lambda shape: const_spec(shape, single_buffer)
        return pl.pallas_call(
            _attnpool_kernel,
            out_shape=jax.ShapeDtypeStruct((N_pad, Dout_pad), jnp.float32),
            grid_spec=pltpu.PrefetchScalarGridSpec(
                num_scalar_prefetch=0,
                grid=(N_pad // Bt,),
                in_specs=[
                    pl.BlockSpec((Bt * HW, C), lambda n: (n, 0)),   # x rows (only streamed operand)
                    cs((Bt * HW, 2 * C)),                           # pos/bias slab for spatial k/v
                    cs((1, C)),                                     # pos/bias for mean-token q
                    cs((1, 2 * C)),                                 # pos/bias for mean-token k/v
                    cs((C, C)),                                     # Wq (scale folded)
                    cs((C, 2 * C)),                                 # [Wk | Wv]
                    cs((C, Dout_pad)),                              # Wc
                    cs((1, Dout_pad)),                              # bc
                    cs((C, H)),                                     # head-segment matrix
                    cs((H, C)),                                     # head-segment matrix, transposed
                    cs((Bt, Bt * HW)),                              # batch-segment matrix
                    cs((Bt * HW, Bt)),                              # batch-segment matrix, transposed
                ],
                out_specs=pl.BlockSpec((Bt, Dout_pad), lambda n: (n, 0)),
            ),
            compiler_params=pltpu.CompilerParams(
                dimension_semantics=("parallel",),
                vmem_limit_bytes=vmem_limit_mb * 1024 * 1024,
            ),
        )(x_rows, poskv_sp, posq_m, poskv_m, wq, wkv, wc, bc, seg, segt, smat, smat_t)

    try:
        out = run(single_buffer=True)
    except Exception:  # conservative fallback for JAX builds without BlockSpec pipeline_mode
        out = run(single_buffer=False)
    return out[:N, :Dout]


def ref_attention_pool2d(x_nchw, params, num_heads):
    """Pure-JAX f32 reference mirroring F.multi_head_attention_forward semantics."""
    N, C, H, W = x_nchw.shape
    x = jnp.transpose(x_nchw.reshape(N, C, H * W), (2, 0, 1))          # (HW, N, C)
    x = jnp.concatenate([x.mean(axis=0, keepdims=True), x], axis=0)    # (L, N, C)
    x = x + params["pos"][:, None, :]
    q = x[:1] @ params["wq"].T + params["bq"]                          # (1, N, C)
    k = x @ params["wk"].T + params["bk"]                              # (L, N, C)
    v = x @ params["wv"].T + params["bv"]
    d = C // num_heads
    L = x.shape[0]
    qh = q.reshape(1, N, num_heads, d)
    kh = k.reshape(L, N, num_heads, d)
    vh = v.reshape(L, N, num_heads, d)
    scores = jnp.einsum("qnhd,lnhd->nhql", qh, kh) / jnp.sqrt(jnp.float32(d))
    attn = jax.nn.softmax(scores, axis=-1)
    out = jnp.einsum("nhql,lnhd->qnhd", attn, vh).reshape(1, N, C)
    y = out @ params["wc"].T + params["bc"]
    return y[0]


def init_params(key, spacial_dim, embed_dim, output_dim):
    L = spacial_dim ** 2 + 1
    ks = jax.random.split(key, 9)
    scale = 0.05
    return {
        "pos": jax.random.normal(ks[0], (L, embed_dim), jnp.float32) / (embed_dim ** 0.5),
        "wq": scale * jax.random.normal(ks[1], (embed_dim, embed_dim), jnp.float32),
        "bq": scale * jax.random.normal(ks[2], (embed_dim,), jnp.float32),
        "wk": scale * jax.random.normal(ks[3], (embed_dim, embed_dim), jnp.float32),
        "bk": scale * jax.random.normal(ks[4], (embed_dim,), jnp.float32),
        "wv": scale * jax.random.normal(ks[5], (embed_dim, embed_dim), jnp.float32),
        "bv": scale * jax.random.normal(ks[6], (embed_dim,), jnp.float32),
        "wc": scale * jax.random.normal(ks[7], (output_dim, embed_dim), jnp.float32),
        "bc": scale * jax.random.normal(ks[8], (output_dim,), jnp.float32),
    }


if __name__ == "__main__":
    def run_case(key, N, C, S, num_heads, Dout, batch_tile=8):
        k_x, k_p = jax.random.split(key)
        x = jax.random.normal(k_x, (N, C, S, S), jnp.float32)
        params = init_params(k_p, S, C, Dout)
        y = jax.block_until_ready(
            attention_pool2d(x, params, num_heads, batch_tile=batch_tile))
        y_ref = jax.block_until_ready(ref_attention_pool2d(x, params, num_heads))
        assert y.shape == (N, Dout)
        err = float(jnp.max(jnp.abs(y - y_ref)))
        # bf16 matmul operands / bf16 activation ingest vs f32 reference -> modest tolerance.
        assert jnp.allclose(y, y_ref, rtol=2e-2, atol=2e-2), (
            f"Pallas output mismatch vs JAX reference, max abs err {err}")

    key = jax.random.PRNGKey(0)
    k1, k2 = jax.random.split(key)
    # Case 1: whole (padded) batch in a single grid step (N=2 -> Bt=8, grid=1).
    run_case(k1, N=2, C=32, S=4, num_heads=4, Dout=32)
    # Case 2: multi-step grid with batch padding (N=10 -> Bt=8, N_pad=16, grid=2).
    run_case(k2, N=10, C=64, S=3, num_heads=8, Dout=48)

    print("KERNEL_OK")
</pallas_src>

<mosaic_0001>
module attributes {stable_mosaic.version = 11 : i64} {
  func.func @_attnpool_kernel(%arg0: i32, %arg1: memref<128x32xbf16, #tpu.memory_space<vmem>>, %arg2: memref<128x64xf32, #tpu.memory_space<vmem>>, %arg3: memref<1x32xf32, #tpu.memory_space<vmem>>, %arg4: memref<1x64xf32, #tpu.memory_space<vmem>>, %arg5: memref<32x32xbf16, #tpu.memory_space<vmem>>, %arg6: memref<32x64xbf16, #tpu.memory_space<vmem>>, %arg7: memref<32x128xbf16, #tpu.memory_space<vmem>>, %arg8: memref<1x128xf32, #tpu.memory_space<vmem>>, %arg9: memref<32x4xbf16, #tpu.memory_space<vmem>>, %arg10: memref<4x32xbf16, #tpu.memory_space<vmem>>, %arg11: memref<8x128xbf16, #tpu.memory_space<vmem>>, %arg12: memref<128x8xbf16, #tpu.memory_space<vmem>>, %arg13: memref<8x128xf32, #tpu.memory_space<vmem>>) attributes {dimension_semantics = [#tpu.dimension_semantics<parallel>], iteration_bounds = array<i64: 1>, scalar_prefetch = 0 : i64, scratch_operands = 0 : i64, tpu.core_type = #tpu.core_type<tc>, window_params = [{transform_indices = @transform_0, window_bounds = array<i64: 128, 32>}, {pipeline_mode = #tpu.pipeline_mode<synchronous>, transform_indices = @transform_1, window_bounds = array<i64: 128, 64>}, {pipeline_mode = #tpu.pipeline_mode<synchronous>, transform_indices = @transform_2, window_bounds = array<i64: 1, 32>}, {pipeline_mode = #tpu.pipeline_mode<synchronous>, transform_indices = @transform_3, window_bounds = array<i64: 1, 64>}, {pipeline_mode = #tpu.pipeline_mode<synchronous>, transform_indices = @transform_4, window_bounds = array<i64: 32, 32>}, {pipeline_mode = #tpu.pipeline_mode<synchronous>, transform_indices = @transform_5, window_bounds = array<i64: 32, 64>}, {pipeline_mode = #tpu.pipeline_mode<synchronous>, transform_indices = @transform_6, window_bounds = array<i64: 32, 128>}, {pipeline_mode = #tpu.pipeline_mode<synchronous>, transform_indices = @transform_7, window_bounds = array<i64: 1, 128>}, {pipeline_mode = #tpu.pipeline_mode<synchronous>, transform_indices = @transform_8, window_bounds = array<i64: 32, 4>}, {pipeline_mode = #tpu.pipeline_mode<synchronous>, transform_indices = @transform_9, window_bounds = array<i64: 4, 32>}, {pipeline_mode = #tpu.pipeline_mode<synchronous>, transform_indices = @transform_10, window_bounds = array<i64: 8, 128>}, {pipeline_mode = #tpu.pipeline_mode<synchronous>, transform_indices = @transform_11, window_bounds = array<i64: 128, 8>}, {transform_indices = @transform_12, window_bounds = array<i64: 8, 128>}]} {
    %c0 = arith.constant 0 : index
    %c0_0 = arith.constant 0 : index
    %0 = vector.load %arg1[%c0, %c0_0] : memref<128x32xbf16, #tpu.memory_space<vmem>>, vector<128x32xbf16>
    %c0_1 = arith.constant 0 : index
    %c0_2 = arith.constant 0 : index
    %1 = vector.load %arg11[%c0_1, %c0_2] : memref<8x128xbf16, #tpu.memory_space<vmem>>, vector<8x128xbf16>
    %c0_3 = arith.constant 0 : index
    %c0_4 = arith.constant 0 : index
    %2 = vector.load %arg6[%c0_3, %c0_4] : memref<32x64xbf16, #tpu.memory_space<vmem>>, vector<32x64xbf16>
    %cst = arith.constant dense<0.000000e+00> : vector<8x32xf32>
    %3 = tpu.matmul %1, %0, %cst {dimension_numbers = #tpu.dot_dimension_numbers<[1], [0], [0], [1], [0, 0, 1, 1], [], []>} : vector<8x128xbf16>, vector<128x32xbf16>, vector<8x32xf32> -> vector<8x32xf32>
    %cst_5 = arith.constant 6.250000e-02 : f32
    %4 = vector.broadcast %cst_5 : f32 to vector<8x32xf32>
    %5 = arith.mulf %3, %4 : vector<8x32xf32>
    %6 = arith.truncf %5 : vector<8x32xf32> to vector<8x32xbf16>
    %c0_6 = arith.constant 0 : index
    %c0_7 = arith.constant 0 : index
    %7 = vector.load %arg5[%c0_6, %c0_7] : memref<32x32xbf16, #tpu.memory_space<vmem>>, vector<32x32xbf16>
    %cst_8 = arith.constant dense<0.000000e+00> : vector<8x32xf32>
    %8 = tpu.matmul %6, %7, %cst_8 {dimension_numbers = #tpu.dot_dimension_numbers<[1], [0], [0], [1], [0, 0, 1, 1], [], []>} : vector<8x32xbf16>, vector<32x32xbf16>, vector<8x32xf32> -> vector<8x32xf32>
    %c0_9 = arith.constant 0 : index
    %c0_10 = arith.constant 0 : index
    %9 = vector.load %arg3[%c0_9, %c0_10] : memref<1x32xf32, #tpu.memory_space<vmem>>, vector<1x32xf32>
    %10 = vector.broadcast %9 : vector<1x32xf32> to vector<8x32xf32>
    %11 = arith.addf %8, %10 : vector<8x32xf32>
    %cst_11 = arith.constant dense<0.000000e+00> : vector<8x64xf32>
    %12 = tpu.matmul %6, %2, %cst_11 {dimension_numbers = #tpu.dot_dimension_numbers<[1], [0], [0], [1], [0, 0, 1, 1], [], []>} : vector<8x32xbf16>, vector<32x64xbf16>, vector<8x64xf32> -> vector<8x64xf32>
    %c0_12 = arith.constant 0 : index
    %c0_13 = arith.constant 0 : index
    %13 = vector.load %arg4[%c0_12, %c0_13] : memref<1x64xf32, #tpu.memory_space<vmem>>, vector<1x64xf32>
    %14 = vector.broadcast %13 : vector<1x64xf32> to vector<8x64xf32>
    %15 = arith.addf %12, %14 : vector<8x64xf32>
    %16 = vector.extract_strided_slice %15 {offsets = [0, 0], sizes = [8, 32], strides = [1, 1]} : vector<8x64xf32> to vector<8x32xf32>
    %17 = vector.extract_strided_slice %15 {offsets = [0, 32], sizes = [8, 32], strides = [1, 1]} : vector<8x64xf32> to vector<8x32xf32>
    %cst_14 = arith.constant dense<0.000000e+00> : vector<128x64xf32>
    %18 = tpu.matmul %0, %2, %cst_14 {dimension_numbers = #tpu.dot_dimension_numbers<[1], [0], [0], [1], [0, 0, 1, 1], [], []>} : vector<128x32xbf16>, vector<32x64xbf16>, vector<128x64xf32> -> vector<128x64xf32>
    %c0_15 = arith.constant 0 : index
    %c0_16 = arith.constant 0 : index
    %19 = vector.load %arg2[%c0_15, %c0_16] : memref<128x64xf32, #tpu.memory_space<vmem>>, vector<128x64xf32>
    %20 = arith.addf %18, %19 : vector<128x64xf32>
    %21 = vector.extract_strided_slice %20 {offsets = [0, 0], sizes = [128, 32], strides = [1, 1]} : vector<128x64xf32> to vector<128x32xf32>
    %22 = vector.extract_strided_slice %20 {offsets = [0, 32], sizes = [128, 32], strides = [1, 1]} : vector<128x64xf32> to vector<128x32xf32>
    %c0_17 = arith.constant 0 : index
    %c0_18 = arith.constant 0 : index
    %23 = vector.load %arg12[%c0_17, %c0_18] : memref<128x8xbf16, #tpu.memory_space<vmem>>, vector<128x8xbf16>
    %24 = arith.truncf %11 : vector<8x32xf32> to vector<8x32xbf16>
    %cst_19 = arith.constant dense<0.000000e+00> : vector<128x32xf32>
    %25 = tpu.matmul %23, %24, %cst_19 {dimension_numbers = #tpu.dot_dimension_numbers<[1], [0], [0], [1], [0, 0, 1, 1], [], []>} : vector<128x8xbf16>, vector<8x32xbf16>, vector<128x32xf32> -> vector<128x32xf32>
    %c0_20 = arith.constant 0 : index
    %c0_21 = arith.constant 0 : index
    %26 = vector.load %arg9[%c0_20, %c0_21] : memref<32x4xbf16, #tpu.memory_space<vmem>>, vector<32x4xbf16>
    %27 = arith.mulf %25, %21 : vector<128x32xf32>
    %28 = arith.truncf %27 : vector<128x32xf32> to vector<128x32xbf16>
    %cst_22 = arith.constant dense<0.000000e+00> : vector<128x4xf32>
    %29 = tpu.matmul %28, %26, %cst_22 {dimension_numbers = #tpu.dot_dimension_numbers<[1], [0], [0], [1], [0, 0, 1, 1], [], []>} : vector<128x32xbf16>, vector<32x4xbf16>, vector<128x4xf32> -> vector<128x4xf32>
    %30 = vector.shape_cast %29 : vector<128x4xf32> to vector<8x16x4xf32>
    %31 = arith.mulf %11, %16 : vector<8x32xf32>
    %32 = arith.truncf %31 : vector<8x32xf32> to vector<8x32xbf16>
    %cst_23 = arith.constant dense<0.000000e+00> : vector<8x4xf32>
    %33 = tpu.matmul %32, %26, %cst_23 {dimension_numbers = #tpu.dot_dimension_numbers<[1], [0], [0], [1], [0, 0, 1, 1], [], []>} : vector<8x32xbf16>, vector<32x4xbf16>, vector<8x4xf32> -> vector<8x4xf32>
    %cst_24 = arith.constant dense<0xFF800000> : vector<8x4xf32>
    %34 = vector.multi_reduction <maximumf>, %30, %cst_24 [1] : vector<8x16x4xf32> to vector<8x4xf32>
    %35 = arith.maximumf %34, %33 : vector<8x4xf32>
    %36 = vector.shape_cast %35 : vector<8x4xf32> to vector<8x1x4xf32>
    %37 = vector.broadcast %36 : vector<8x1x4xf32> to vector<8x16x4xf32>
    %38 = arith.subf %30, %37 : vector<8x16x4xf32>
    %39 = math.exp %38 : vector<8x16x4xf32>
    %40 = arith.subf %33, %35 : vector<8x4xf32>
    %41 = math.exp %40 : vector<8x4xf32>
    %cst_25 = arith.constant dense<0.000000e+00> : vector<8x4xf32>
    %42 = vector.multi_reduction <add>, %39, %cst_25 [1] : vector<8x16x4xf32> to vector<8x4xf32>
    %43 = arith.addf %42, %41 : vector<8x4xf32>
    %44 = tpu.reciprocal %43 {approx = true} : vector<8x4xf32> -> vector<8x4xf32>
    %45 = vector.shape_cast %44 : vector<8x4xf32> to vector<8x1x4xf32>
    %46 = vector.broadcast %45 : vector<8x1x4xf32> to vector<8x16x4xf32>
    %47 = arith.mulf %39, %46 : vector<8x16x4xf32>
    %48 = arith.mulf %41, %44 : vector<8x4xf32>
    %c0_26 = arith.constant 0 : index
    %c0_27 = arith.constant 0 : index
    %49 = vector.load %arg10[%c0_26, %c0_27] : memref<4x32xbf16, #tpu.memory_space<vmem>>, vector<4x32xbf16>
    %50 = vector.shape_cast %47 : vector<8x16x4xf32> to vector<128x4xf32>
    %51 = arith.truncf %50 : vector<128x4xf32> to vector<128x4xbf16>
    %cst_28 = arith.constant dense<0.000000e+00> : vector<128x32xf32>
    %52 = tpu.matmul %51, %49, %cst_28 {dimension_numbers = #tpu.dot_dimension_numbers<[1], [0], [0], [1], [0, 0, 1, 1], [], []>} : vector<128x4xbf16>, vector<4x32xbf16>, vector<128x32xf32> -> vector<128x32xf32>
    %53 = arith.mulf %52, %22 : vector<128x32xf32>
    %54 = arith.truncf %53 : vector<128x32xf32> to vector<128x32xbf16>
    %cst_29 = arith.constant dense<0.000000e+00> : vector<8x32xf32>
    %55 = tpu.matmul %1, %54, %cst_29 {dimension_numbers = #tpu.dot_dimension_numbers<[1], [0], [0], [1], [0, 0, 1, 1], [], []>} : vector<8x128xbf16>, vector<128x32xbf16>, vector<8x32xf32> -> vector<8x32xf32>
    %56 = arith.truncf %48 : vector<8x4xf32> to vector<8x4xbf16>
    %cst_30 = arith.constant dense<0.000000e+00> : vector<8x32xf32>
    %57 = tpu.matmul %56, %49, %cst_30 {dimension_numbers = #tpu.dot_dimension_numbers<[1], [0], [0], [1], [0, 0, 1, 1], [], []>} : vector<8x4xbf16>, vector<4x32xbf16>, vector<8x32xf32> -> vector<8x32xf32>
    %58 = arith.mulf %57, %17 : vector<8x32xf32>
    %59 = arith.addf %55, %58 : vector<8x32xf32>
    %60 = arith.truncf %59 : vector<8x32xf32> to vector<8x32xbf16>
    %c0_31 = arith.constant 0 : index
    %c0_32 = arith.constant 0 : index
    %61 = vector.load %arg7[%c0_31, %c0_32] : memref<32x128xbf16, #tpu.memory_space<vmem>>, vector<32x128xbf16>
    %cst_33 = arith.constant dense<0.000000e+00> : vector<8x128xf32>
    %62 = tpu.matmul %60, %61, %cst_33 {dimension_numbers = #tpu.dot_dimension_numbers<[1], [0], [0], [1], [0, 0, 1, 1], [], []>} : vector<8x32xbf16>, vector<32x128xbf16>, vector<8x128xf32> -> vector<8x128xf32>
    %c0_34 = arith.constant 0 : index
    %c0_35 = arith.constant 0 : index
    %63 = vector.load %arg8[%c0_34, %c0_35] : memref<1x128xf32, #tpu.memory_space<vmem>>, vector<1x128xf32>
    %64 = vector.broadcast %63 : vector<1x128xf32> to vector<8x128xf32>
    %65 = arith.addf %62, %64 : vector<8x128xf32>
    %c0_36 = arith.constant 0 : index
    %c0_37 = arith.constant 0 : index
    %66 = vector.load %arg13[%c0_36, %c0_37] : memref<8x128xf32, #tpu.memory_space<vmem>>, vector<8x128xf32>
    tpu.vector_store %arg13[%c0_36, %c0_37], %65 {strides = array<i32>} : memref<8x128xf32, #tpu.memory_space<vmem>>, vector<8x128xf32>,
    return
  }
  func.func @transform_0(%arg0: i32) -> (i32, i32) {
    %c0_i32 = arith.constant 0 : i32
    %c0_i32_0 = arith.constant 0 : i32
    return %arg0, %c0_i32 : i32, i32
  }
  func.func @transform_1(%arg0: i32) -> (i32, i32) {
    %c0_i32 = arith.constant 0 : i32
    %c0_i32_0 = arith.constant 0 : i32
    %c0_i32_1 = arith.constant 0 : i32
    return %c0_i32, %c0_i32_0 : i32, i32
  }
  func.func @transform_2(%arg0: i32) -> (i32, i32) {
    %c0_i32 = arith.constant 0 : i32
    %c0_i32_0 = arith.constant 0 : i32
    %c0_i32_1 = arith.constant 0 : i32
    return %c0_i32, %c0_i32_0 : i32, i32
  }
  func.func @transform_3(%arg0: i32) -> (i32, i32) {
    %c0_i32 = arith.constant 0 : i32
    %c0_i32_0 = arith.constant 0 : i32
    %c0_i32_1 = arith.constant 0 : i32
    return %c0_i32, %c0_i32_0 : i32, i32
  }
  func.func @transform_4(%arg0: i32) -> (i32, i32) {
    %c0_i32 = arith.constant 0 : i32
    %c0_i32_0 = arith.constant 0 : i32
    %c0_i32_1 = arith.constant 0 : i32
    return %c0_i32, %c0_i32_0 : i32, i32
  }
  func.func @transform_5(%arg0: i32) -> (i32, i32) {
    %c0_i32 = arith.constant 0 : i32
    %c0_i32_0 = arith.constant 0 : i32
    %c0_i32_1 = arith.constant 0 : i32
    return %c0_i32, %c0_i32_0 : i32, i32
  }
  func.func @transform_6(%arg0: i32) -> (i32, i32) {
    %c0_i32 = arith.constant 0 : i32
    %c0_i32_0 = arith.constant 0 : i32
    %c0_i32_1 = arith.constant 0 : i32
    return %c0_i32, %c0_i32_0 : i32, i32
  }
  func.func @transform_7(%arg0: i32) -> (i32, i32) {
    %c0_i32 = arith.constant 0 : i32
    %c0_i32_0 = arith.constant 0 : i32
    %c0_i32_1 = arith.constant 0 : i32
    return %c0_i32, %c0_i32_0 : i32, i32
  }
  func.func @transform_8(%arg0: i32) -> (i32, i32) {
    %c0_i32 = arith.constant 0 : i32
    %c0_i32_0 = arith.constant 0 : i32
    %c0_i32_1 = arith.constant 0 : i32
    return %c0_i32, %c0_i32_0 : i32, i32
  }
  func.func @transform_9(%arg0: i32) -> (i32, i32) {
    %c0_i32 = arith.constant 0 : i32
    %c0_i32_0 = arith.constant 0 : i32
    %c0_i32_1 = arith.constant 0 : i32
    return %c0_i32, %c0_i32_0 : i32, i32
  }
  func.func @transform_10(%arg0: i32) -> (i32, i32) {
    %c0_i32 = arith.constant 0 : i32
    %c0_i32_0 = arith.constant 0 : i32
    %c0_i32_1 = arith.constant 0 : i32
    return %c0_i32, %c0_i32_0 : i32, i32
  }
  func.func @transform_11(%arg0: i32) -> (i32, i32) {
    %c0_i32 = arith.constant 0 : i32
    %c0_i32_0 = arith.constant 0 : i32
    %c0_i32_1 = arith.constant 0 : i32
    return %c0_i32, %c0_i32_0 : i32, i32
  }
  func.func @transform_12(%arg0: i32) -> (i32, i32) {
    %c0_i32 = arith.constant 0 : i32
    %c0_i32_0 = arith.constant 0 : i32
    return %arg0, %c0_i32 : i32, i32
  }
}

module attributes {stable_mosaic.version = 11 : i64} {
  func.func @_attnpool_kernel(%arg0: i32, %arg1: memref<128x32xbf16, #tpu.memory_space<vmem>>, %arg2: memref<128x64xf32, #tpu.memory_space<vmem>>, %arg3: memref<1x32xf32, #tpu.memory_space<vmem>>, %arg4: memref<1x64xf32, #tpu.memory_space<vmem>>, %arg5: memref<32x32xbf16, #tpu.memory_space<vmem>>, %arg6: memref<32x64xbf16, #tpu.memory_space<vmem>>, %arg7: memref<32x128xbf16, #tpu.memory_space<vmem>>, %arg8: memref<1x128xf32, #tpu.memory_space<vmem>>, %arg9: memref<32x4xbf16, #tpu.memory_space<vmem>>, %arg10: memref<4x32xbf16, #tpu.memory_space<vmem>>, %arg11: memref<8x128xbf16, #tpu.memory_space<vmem>>, %arg12: memref<128x8xbf16, #tpu.memory_space<vmem>>, %arg13: memref<8x128xf32, #tpu.memory_space<vmem>>) attributes {dimension_semantics = [#tpu.dimension_semantics<parallel>], iteration_bounds = array<i64: 1>, scalar_prefetch = 0 : i64, scratch_operands = 0 : i64, tpu.core_type = #tpu.core_type<tc>, window_params = [{transform_indices = @transform_0, window_bounds = array<i64: 128, 32>}, {pipeline_mode = #tpu.pipeline_mode<synchronous>, transform_indices = @transform_1, window_bounds = array<i64: 128, 64>}, {pipeline_mode = #tpu.pipeline_mode<synchronous>, transform_indices = @transform_2, window_bounds = array<i64: 1, 32>}, {pipeline_mode = #tpu.pipeline_mode<synchronous>, transform_indices = @transform_3, window_bounds = array<i64: 1, 64>}, {pipeline_mode = #tpu.pipeline_mode<synchronous>, transform_indices = @transform_4, window_bounds = array<i64: 32, 32>}, {pipeline_mode = #tpu.pipeline_mode<synchronous>, transform_indices = @transform_5, window_bounds = array<i64: 32, 64>}, {pipeline_mode = #tpu.pipeline_mode<synchronous>, transform_indices = @transform_6, window_bounds = array<i64: 32, 128>}, {pipeline_mode = #tpu.pipeline_mode<synchronous>, transform_indices = @transform_7, window_bounds = array<i64: 1, 128>}, {pipeline_mode = #tpu.pipeline_mode<synchronous>, transform_indices = @transform_8, window_bounds = array<i64: 32, 4>}, {pipeline_mode = #tpu.pipeline_mode<synchronous>, transform_indices = @transform_9, window_bounds = array<i64: 4, 32>}, {pipeline_mode = #tpu.pipeline_mode<synchronous>, transform_indices = @transform_10, window_bounds = array<i64: 8, 128>}, {pipeline_mode = #tpu.pipeline_mode<synchronous>, transform_indices = @transform_11, window_bounds = array<i64: 128, 8>}, {transform_indices = @transform_12, window_bounds = array<i64: 8, 128>}]} {
    %c0 = arith.constant 0 : index
    %c0_0 = arith.constant 0 : index
    %0 = vector.load %arg1[%c0, %c0_0] : memref<128x32xbf16, #tpu.memory_space<vmem>>, vector<128x32xbf16>
    %c0_1 = arith.constant 0 : index
    %c0_2 = arith.constant 0 : index
    %1 = vector.load %arg11[%c0_1, %c0_2] : memref<8x128xbf16, #tpu.memory_space<vmem>>, vector<8x128xbf16>
    %c0_3 = arith.constant 0 : index
    %c0_4 = arith.constant 0 : index
    %2 = vector.load %arg6[%c0_3, %c0_4] : memref<32x64xbf16, #tpu.memory_space<vmem>>, vector<32x64xbf16>
    %cst = arith.constant dense<0.000000e+00> : vector<8x32xf32>
    %3 = tpu.matmul %1, %0, %cst {dimension_numbers = #tpu.dot_dimension_numbers<[1], [0], [0], [1], [0, 0, 1, 1], [], []>} : vector<8x128xbf16>, vector<128x32xbf16>, vector<8x32xf32> -> vector<8x32xf32>
    %cst_5 = arith.constant 6.250000e-02 : f32
    %4 = vector.broadcast %cst_5 : f32 to vector<8x32xf32>
    %5 = arith.mulf %3, %4 : vector<8x32xf32>
    %6 = arith.truncf %5 : vector<8x32xf32> to vector<8x32xbf16>
    %c0_6 = arith.constant 0 : index
    %c0_7 = arith.constant 0 : index
    %7 = vector.load %arg5[%c0_6, %c0_7] : memref<32x32xbf16, #tpu.memory_space<vmem>>, vector<32x32xbf16>
    %cst_8 = arith.constant dense<0.000000e+00> : vector<8x32xf32>
    %8 = tpu.matmul %6, %7, %cst_8 {dimension_numbers = #tpu.dot_dimension_numbers<[1], [0], [0], [1], [0, 0, 1, 1], [], []>} : vector<8x32xbf16>, vector<32x32xbf16>, vector<8x32xf32> -> vector<8x32xf32>
    %c0_9 = arith.constant 0 : index
    %c0_10 = arith.constant 0 : index
    %9 = vector.load %arg3[%c0_9, %c0_10] : memref<1x32xf32, #tpu.memory_space<vmem>>, vector<1x32xf32>
    %10 = vector.broadcast %9 : vector<1x32xf32> to vector<8x32xf32>
    %11 = arith.addf %8, %10 : vector<8x32xf32>
    %cst_11 = arith.constant dense<0.000000e+00> : vector<8x64xf32>
    %12 = tpu.matmul %6, %2, %cst_11 {dimension_numbers = #tpu.dot_dimension_numbers<[1], [0], [0], [1], [0, 0, 1, 1], [], []>} : vector<8x32xbf16>, vector<32x64xbf16>, vector<8x64xf32> -> vector<8x64xf32>
    %c0_12 = arith.constant 0 : index
    %c0_13 = arith.constant 0 : index
    %13 = vector.load %arg4[%c0_12, %c0_13] : memref<1x64xf32, #tpu.memory_space<vmem>>, vector<1x64xf32>
    %14 = vector.broadcast %13 : vector<1x64xf32> to vector<8x64xf32>
    %15 = arith.addf %12, %14 : vector<8x64xf32>
    %16 = vector.extract_strided_slice %15 {offsets = [0, 0], sizes = [8, 32], strides = [1, 1]} : vector<8x64xf32> to vector<8x32xf32>
    %17 = vector.extract_strided_slice %15 {offsets = [0, 32], sizes = [8, 32], strides = [1, 1]} : vector<8x64xf32> to vector<8x32xf32>
    %cst_14 = arith.constant dense<0.000000e+00> : vector<128x64xf32>
    %18 = tpu.matmul %0, %2, %cst_14 {dimension_numbers = #tpu.dot_dimension_numbers<[1], [0], [0], [1], [0, 0, 1, 1], [], []>} : vector<128x32xbf16>, vector<32x64xbf16>, vector<128x64xf32> -> vector<128x64xf32>
    %c0_15 = arith.constant 0 : index
    %c0_16 = arith.constant 0 : index
    %19 = vector.load %arg2[%c0_15, %c0_16] : memref<128x64xf32, #tpu.memory_space<vmem>>, vector<128x64xf32>
    %20 = arith.addf %18, %19 : vector<128x64xf32>
    %21 = vector.extract_strided_slice %20 {offsets = [0, 0], sizes = [128, 32], strides = [1, 1]} : vector<128x64xf32> to vector<128x32xf32>
    %22 = vector.extract_strided_slice %20 {offsets = [0, 32], sizes = [128, 32], strides = [1, 1]} : vector<128x64xf32> to vector<128x32xf32>
    %c0_17 = arith.constant 0 : index
    %c0_18 = arith.constant 0 : index
    %23 = vector.load %arg12[%c0_17, %c0_18] : memref<128x8xbf16, #tpu.memory_space<vmem>>, vector<128x8xbf16>
    %24 = arith.truncf %11 : vector<8x32xf32> to vector<8x32xbf16>
    %cst_19 = arith.constant dense<0.000000e+00> : vector<128x32xf32>
    %25 = tpu.matmul %23, %24, %cst_19 {dimension_numbers = #tpu.dot_dimension_numbers<[1], [0], [0], [1], [0, 0, 1, 1], [], []>} : vector<128x8xbf16>, vector<8x32xbf16>, vector<128x32xf32> -> vector<128x32xf32>
    %c0_20 = arith.constant 0 : index
    %c0_21 = arith.constant 0 : index
    %26 = vector.load %arg9[%c0_20, %c0_21] : memref<32x4xbf16, #tpu.memory_space<vmem>>, vector<32x4xbf16>
    %27 = arith.mulf %25, %21 : vector<128x32xf32>
    %28 = arith.truncf %27 : vector<128x32xf32> to vector<128x32xbf16>
    %cst_22 = arith.constant dense<0.000000e+00> : vector<128x4xf32>
    %29 = tpu.matmul %28, %26, %cst_22 {dimension_numbers = #tpu.dot_dimension_numbers<[1], [0], [0], [1], [0, 0, 1, 1], [], []>} : vector<128x32xbf16>, vector<32x4xbf16>, vector<128x4xf32> -> vector<128x4xf32>
    %30 = vector.shape_cast %29 : vector<128x4xf32> to vector<8x16x4xf32>
    %31 = arith.mulf %11, %16 : vector<8x32xf32>
    %32 = arith.truncf %31 : vector<8x32xf32> to vector<8x32xbf16>
    %cst_23 = arith.constant dense<0.000000e+00> : vector<8x4xf32>
    %33 = tpu.matmul %32, %26, %cst_23 {dimension_numbers = #tpu.dot_dimension_numbers<[1], [0], [0], [1], [0, 0, 1, 1], [], []>} : vector<8x32xbf16>, vector<32x4xbf16>, vector<8x4xf32> -> vector<8x4xf32>
    %cst_24 = arith.constant dense<0xFF800000> : vector<8x4xf32>
    %34 = vector.multi_reduction <maximumf>, %30, %cst_24 [1] : vector<8x16x4xf32> to vector<8x4xf32>
    %35 = arith.maximumf %34, %33 : vector<8x4xf32>
    %36 = vector.shape_cast %35 : vector<8x4xf32> to vector<8x1x4xf32>
    %37 = vector.broadcast %36 : vector<8x1x4xf32> to vector<8x16x4xf32>
    %38 = arith.subf %30, %37 : vector<8x16x4xf32>
    %39 = math.exp %38 : vector<8x16x4xf32>
    %40 = arith.subf %33, %35 : vector<8x4xf32>
    %41 = math.exp %40 : vector<8x4xf32>
    %cst_25 = arith.constant dense<0.000000e+00> : vector<8x4xf32>
    %42 = vector.multi_reduction <add>, %39, %cst_25 [1] : vector<8x16x4xf32> to vector<8x4xf32>
    %43 = arith.addf %42, %41 : vector<8x4xf32>
    %44 = tpu.reciprocal %43 {approx = true} : vector<8x4xf32> -> vector<8x4xf32>
    %45 = vector.shape_cast %44 : vector<8x4xf32> to vector<8x1x4xf32>
    %46 = vector.broadcast %45 : vector<8x1x4xf32> to vector<8x16x4xf32>
    %47 = arith.mulf %39, %46 : vector<8x16x4xf32>
    %48 = arith.mulf %41, %44 : vector<8x4xf32>
    %c0_26 = arith.constant 0 : index
    %c0_27 = arith.constant 0 : index
    %49 = vector.load %arg10[%c0_26, %c0_27] : memref<4x32xbf16, #tpu.memory_space<vmem>>, vector<4x32xbf16>
    %50 = vector.shape_cast %47 : vector<8x16x4xf32> to vector<128x4xf32>
    %51 = arith.truncf %50 : vector<128x4xf32> to vector<128x4xbf16>
    %cst_28 = arith.constant dense<0.000000e+00> : vector<128x32xf32>
    %52 = tpu.matmul %51, %49, %cst_28 {dimension_numbers = #tpu.dot_dimension_numbers<[1], [0], [0], [1], [0, 0, 1, 1], [], []>} : vector<128x4xbf16>, vector<4x32xbf16>, vector<128x32xf32> -> vector<128x32xf32>
    %53 = arith.mulf %52, %22 : vector<128x32xf32>
    %54 = arith.truncf %53 : vector<128x32xf32> to vector<128x32xbf16>
    %cst_29 = arith.constant dense<0.000000e+00> : vector<8x32xf32>
    %55 = tpu.matmul %1, %54, %cst_29 {dimension_numbers = #tpu.dot_dimension_numbers<[1], [0], [0], [1], [0, 0, 1, 1], [], []>} : vector<8x128xbf16>, vector<128x32xbf16>, vector<8x32xf32> -> vector<8x32xf32>
    %56 = arith.truncf %48 : vector<8x4xf32> to vector<8x4xbf16>
    %cst_30 = arith.constant dense<0.000000e+00> : vector<8x32xf32>
    %57 = tpu.matmul %56, %49, %cst_30 {dimension_numbers = #tpu.dot_dimension_numbers<[1], [0], [0], [1], [0, 0, 1, 1], [], []>} : vector<8x4xbf16>, vector<4x32xbf16>, vector<8x32xf32> -> vector<8x32xf32>
    %58 = arith.mulf %57, %17 : vector<8x32xf32>
    %59 = arith.addf %55, %58 : vector<8x32xf32>
    %60 = arith.truncf %59 : vector<8x32xf32> to vector<8x32xbf16>
    %c0_31 = arith.constant 0 : index
    %c0_32 = arith.constant 0 : index
    %61 = vector.load %arg7[%c0_31, %c0_32] : memref<32x128xbf16, #tpu.memory_space<vmem>>, vector<32x128xbf16>
    %cst_33 = arith.constant dense<0.000000e+00> : vector<8x128xf32>
    %62 = tpu.matmul %60, %61, %cst_33 {dimension_numbers = #tpu.dot_dimension_numbers<[1], [0], [0], [1], [0, 0, 1, 1], [], []>} : vector<8x32xbf16>, vector<32x128xbf16>, vector<8x128xf32> -> vector<8x128xf32>
    %c0_34 = arith.constant 0 : index
    %c0_35 = arith.constant 0 : index
    %63 = vector.load %arg8[%c0_34, %c0_35] : memref<1x128xf32, #tpu.memory_space<vmem>>, vector<1x128xf32>
    %64 = vector.broadcast %63 : vector<1x128xf32> to vector<8x128xf32>
    %65 = arith.addf %62, %64 : vector<8x128xf32>
    %c0_36 = arith.constant 0 : index
    %c0_37 = arith.constant 0 : index
    %66 = vector.load %arg13[%c0_36, %c0_37] : memref<8x128xf32, #tpu.memory_space<vmem>>, vector<8x128xf32>
    tpu.vector_store %arg13[%c0_36, %c0_37], %65 {strides = array<i32>} : memref<8x128xf32, #tpu.memory_space<vmem>>, vector<8x128xf32>,
    return
  }
  func.func @transform_0(%arg0: i32) -> (i32, i32) {
    %c0_i32 = arith.constant 0 : i32
    %c0_i32_0 = arith.constant 0 : i32
    return %arg0, %c0_i32 : i32, i32
  }
  func.func @transform_1(%arg0: i32) -> (i32, i32) {
    %c0_i32 = arith.constant 0 : i32
    %c0_i32_0 = arith.constant 0 : i32
    %c0_i32_1 = arith.constant 0 : i32
    return %c0_i32, %c0_i32_0 : i32, i32
  }
  func.func @transform_2(%arg0: i32) -> (i32, i32) {
    %c0_i32 = arith.constant 0 : i32
    %c0_i32_0 = arith.constant 0 : i32
    %c0_i32_1 = arith.constant 0 : i32
    return %c0_i32, %c0_i32_0 : i32, i32
  }
  func.func @transform_3(%arg0: i32) -> (i32, i32) {
    %c0_i32 = arith.constant 0 : i32
    %c0_i32_0 = arith.constant 0 : i32
    %c0_i32_1 = arith.constant 0 : i32
    return %c0_i32, %c0_i32_0 : i32, i32
  }
  func.func @transform_4(%arg0: i32) -> (i32, i32) {
    %c0_i32 = arith.constant 0 : i32
    %c0_i32_0 = arith.constant 0 : i32
    %c0_i32_1 = arith.constant 0 : i32
    return %c0_i32, %c0_i32_0 : i32, i32
  }
  func.func @transform_5(%arg0: i32) -> (i32, i32) {
    %c0_i32 = arith.constant 0 : i32
    %c0_i32_0 = arith.constant 0 : i32
    %c0_i32_1 = arith.constant 0 : i32
    return %c0_i32, %c0_i32_0 : i32, i32
  }
  func.func @transform_6(%arg0: i32) -> (i32, i32) {
    %c0_i32 = arith.constant 0 : i32
    %c0_i32_0 = arith.constant 0 : i32
    %c0_i32_1 = arith.constant 0 : i32
    return %c0_i32, %c0_i32_0 : i32, i32
  }
  func.func @transform_7(%arg0: i32) -> (i32, i32) {
    %c0_i32 = arith.constant 0 : i32
    %c0_i32_0 = arith.constant 0 : i32
    %c0_i32_1 = arith.constant 0 : i32
    return %c0_i32, %c0_i32_0 : i32, i32
  }
  func.func @transform_8(%arg0: i32) -> (i32, i32) {
    %c0_i32 = arith.constant 0 : i32
    %c0_i32_0 = arith.constant 0 : i32
    %c0_i32_1 = arith.constant 0 : i32
    return %c0_i32, %c0_i32_0 : i32, i32
  }
  func.func @transform_9(%arg0: i32) -> (i32, i32) {
    %c0_i32 = arith.constant 0 : i32
    %c0_i32_0 = arith.constant 0 : i32
    %c0_i32_1 = arith.constant 0 : i32
    return %c0_i32, %c0_i32_0 : i32, i32
  }
  func.func @transform_10(%arg0: i32) -> (i32, i32) {
    %c0_i32 = arith.constant 0 : i32
    %c0_i32_0 = arith.constant 0 : i32
    %c0_i32_1 = arith.constant 0 : i32
    return %c0_i32, %c0_i32_0 : i32, i32
  }
  func.func @transform_11(%arg0: i32) -> (i32, i32) {
    %c0_i32 = arith.constant 0 : i32
    %c0_i32_0 = arith.constant 0 : i32
    %c0_i32_1 = arith.constant 0 : i32
    return %c0_i32, %c0_i32_0 : i32, i32
  }
  func.func @transform_12(%arg0: i32) -> (i32, i32) {
    %c0_i32 = arith.constant 0 : i32
    %c0_i32_0 = arith.constant 0 : i32
    return %arg0, %c0_i32 : i32, i32
  }
}

</mosaic_0001>

<bundles_post_ra>
// kernel: tpu_custom_call.1
= control target key start
LH: loop header
LB: loop body
LE: loop exit
PB: predicated region body
PF: predicated region fallthrough
CT: control target
= control target key end

     0   :  { %s1881_s0 = inlined_call_operand.vmem [shape: bf16[128,32], index: 0, kind: input, shape index: {}]   ;;  %s1882_s1 = inlined_call_operand.vmem [shape: f32[128,64], index: 1, kind: input, shape index: {}]   ;;  %s1883_s2 = inlined_call_operand.vmem [shape: f32[1,32], index: 2, kind: input, shape index: {}]   ;;  %s1884_s3 = inlined_call_operand.vmem [shape: f32[1,64], index: 3, kind: input, shape index: {}]   ;;  %s1885_s4 = inlined_call_operand.vmem [shape: bf16[32,32], index: 4, kind: input, shape index: {}]   ;;  %s1886_s5 = inlined_call_operand.vmem [shape: bf16[32,64], index: 5, kind: input, shape index: {}]   ;;  %s1887_s6 = inlined_call_operand.vmem [shape: bf16[32,128], index: 6, kind: input, shape index: {}]   ;;  %s1888_s7 = inlined_call_operand.vmem [shape: f32[1,128], index: 7, kind: input, shape index: {}]   ;;  %s1889_s8 = inlined_call_operand.vmem [shape: bf16[32,4], index: 8, kind: input, shape index: {}]   ;;  %s1890_s9 = inlined_call_operand.vmem [shape: bf16[4,32], index: 9, kind: input, shape index: {}]   ;;  %s1891_s10 = inlined_call_operand.vmem [shape: bf16[8,128], index: 10, kind: input, shape index: {}]   ;;  %s1892_s11 = inlined_call_operand.vmem [shape: bf16[128,8], index: 11, kind: input, shape index: {}]   ;;  %s1893_s12 = inlined_call_operand.hbm [shape: f32[8,128], index: 12, kind: output, shape index: {}]  }
   0x1   :  { %v1289_v0 = vld [vmem:[%s1881_s0 + $0x38] sm:$0xff]  ;;  %v1291_v1 = vld [vmem:[%s1886_s5 + $0x8] sm:$0xff]  ;;  %v1288_v2 = vld [vmem:[%s1881_s0 + $0x30] sm:$0xff] }
   0x2   :  { %112 = vmatpush.bf16.msra.mxu0 %v1289_v0  ;;  %239 = vmatpush.bf16.msra.mxu3 %v1291_v1  ;;  %v1290_v3 = vld [vmem:[%s1886_s5] sm:$0xff] }
   0x3   :  { %186 = vmatpush.bf16.msra.mxu2 %v1291_v1 }
   0x4   :  { %17 = vsyncpa [#allocation3], 0  ;;  %v1287_v4 = vld [vmem:[%s1881_s0 + $0x28] sm:$0xff]  ;;  %v1282_v5 = vld [vmem:[%s1881_s0] sm:$0xff]  ;;  %vm147_vm0 = vcmask 261120   ;;  %s1388_s28 = smov 96  }
   0x5   :  { %v1286_v6 = vld [vmem:[%s1881_s0 + $0x20] sm:$0xff]  ;;  %v1285_v7 = vld [vmem:[%s1881_s0 + $0x18] sm:$0xff]  ;;  %v1284_v8 = vld [vmem:[%s1881_s0 + $0x10] sm:$0xff]  ;;  %vm364_vm1 = vcmask 1043456   ;;  %vm339_vm2 = vcmask 64512   ;;  %vm548_vm3 = vcmask 31744  }
   0x6   :  { %113 = vmatpush.bf16.msra.mxu0 %v1288_v2  ;;  %240 = vmatpush.bf16.msra.mxu3 %v1290_v3  ;;  %v1283_v9 = vld [vmem:[%s1881_s0 + $0x8] sm:$0xff]  ;;  %v59_v10 = vld [vmem:[%s1891_s10] sm:$0xf]  ;;  %v203_v27 = vld [vmem:[%s1882_s1 + $0x50] sm:$0xff]  ;;  %vm710_vm4 = vcmask 1041409   ;;  %vm713_vm5 = vcmask 1042434  }
   0x7   :  { %187 = vmatpush.bf16.msra.mxu2 %v1290_v3  ;;  %v1293_v11 = vld [vmem:[%s1885_s4 + $0x8] sm:$0xff]  ;;  %v1292_v12 = vld [vmem:[%s1885_s4] sm:$0xff]  ;;  %v204_v30 = vld [vmem:[%s1882_s1 + $0x58] sm:$0xff]  ;;  %vm716_vm6 = vcmask 1043459   ;;  %vm919_vm7 = vcmask 1041408   ;;  %vm719_vm8 = vcmask 1044484  }
   0x8   :  { %157 = vmatpush.bf16.msra.mxu1 %v1293_v11  ;;  %v199_v33 = vld [vmem:[%s1882_s1 + $0x30] sm:$0xff]  ;;  %v205_v34 = vld [vmem:[%s1882_s1 + $0x60] sm:$0xff]  ;;  %v198_v38 = vld [vmem:[%s1882_s1 + $0x28] sm:$0xff]  ;;  %vm722_vm9 = vcmask 1045509   ;;  %vm725_vm10 = vcmask 1046534   ;;  %vm728_vm11 = vcmask 1047559  }
   0x9   :  { %1199 = vmatmul.msk.bf16.vlgmr.msra.gmra.mxu3 %vm147_vm0, %v1282_v5  ;;  %v206_v39 = vld [vmem:[%s1882_s1 + $0x68] sm:$0xff]  ;;  %v193_v43 = vld [vmem:[%s1882_s1] sm:$0xff]  ;;  %v196_v51 = vld [vmem:[%s1882_s1 + $0x18] sm:$0xff]  ;;  %s1389_s24 = smov [#allocation2]   ;;  %s1140_s26 = sshll.u32 %s1893_s12, 4  ;;  %s1141_s26 = int_to_ptr.hbm [resolvable:$true] %s1140_s26 }
   0xa   :  { %114 = vmatpush.bf16.msra.mxu0 %v1287_v4  ;;  %v202_v44 = vld [vmem:[%s1882_s1 + $0x48] sm:$0xff]  ;;  %v197_v47 = vld [vmem:[%s1882_s1 + $0x20] sm:$0xff]  ;;  %v1296_v3 = vld [vmem:[%s1892_s11 + $0x10] sm:$0xff] }
   0xb   :  { %v1303_v49 = vld [vmem:[%s1889_s8 + $0x8] sm:$0xff]  ;;  %v1302_v50 = vld [vmem:[%s1889_s8] sm:$0xff] }
   0xc   :  { %158 = vmatpush.bf16.msra.mxu1 %v1292_v12  ;;  %541 = vmatpush.bf16.msrb.mxu3 %v1303_v49  ;;  %v1308_v53 = vld [vmem:[%s1883_s2] ss:$0 sm:$0xff] }
   0xd   :  { %487 = vmatpush.bf16.msrb.mxu2 %v1303_v49  ;;  %v1309_v56 = vld [vmem:[%s1884_s3] ss:$0 sm:$0xff] }
   0xe   :  { %115 = vmatpush.bf16.msra.mxu0 %v1286_v6  ;;  %v1294_v59 = vld [vmem:[%s1892_s11] sm:$0xff] }
   0xf   :  { %v201_v11 = vld [vmem:[%s1882_s1 + $0x40] sm:$0xff] }
  0x10   :  { %542 = vmatpush.bf16.msrb.mxu3 %v1302_v50  ;;  %v1298_v12 = vld [vmem:[%s1892_s11 + $0x20] sm:$0xff] }
  0x11   :  { %488 = vmatpush.bf16.msrb.mxu2 %v1302_v50 }
  0x12   :  { %116 = vmatpush.bf16.msra.mxu0 %v1285_v7 }
  0x16   :  { %117 = vmatpush.bf16.msra.mxu0 %v1284_v8 }
  0x19   :  { %1200 = vmatmul.msk.bf16.gmra.mxu3 %vm147_vm0, %v1283_v9 }
  0x1a   :  { %118 = vmatpush.bf16.msra.mxu0 %v1283_v9 }
  0x1e   :  { %119 = vmatpush.bf16.msra.mxu0 %v1282_v5  ;;  %v207_v5 = vld [vmem:[%s1882_s1 + $0x70] sm:$0xff] }
  0x21   :  { %120 = vmatmul.bf16.vlgmr.msra.gmra.mxu0 %v59_v10 }
  0x29   :  { %1201 = vmatmul.msk.bf16.gmra.mxu3 %vm147_vm0, %v1284_v8  ;;  %v208_v8 = vld [vmem:[%s1882_s1 + $0x78] sm:$0xff] }
  0x39   :  { %1202 = vmatmul.msk.bf16.gmra.mxu3 %vm147_vm0, %v1285_v7 }
  0x49   :  { %1203 = vmatmul.msk.bf16.gmra.mxu3 %vm147_vm0, %v1286_v6 }
  0x59   :  { %1204 = vmatmul.msk.bf16.gmra.mxu3 %vm147_vm0, %v1287_v4  ;;  %v1297_v4 = vld [vmem:[%s1892_s11 + $0x18] sm:$0xff] }
  0x69   :  { %1205 = vmatmul.msk.bf16.gmra.mxu3 %vm147_vm0, %v1288_v2  ;;  %v1295_v2 = vld [vmem:[%s1892_s11 + $0x8] sm:$0xff] }
  0x79   :  { %1206 = vmatmul.msk.bf16.gmra.mxu3 %vm147_vm0, %v1289_v0 }
  0x8c   :  { %v242_v13 = vpop.f32.mrf.mxu3 }
  0x8d   :  { %v1560_v45 = vadd.f32 %v242_v13, %v193_v43 }
  0x94   :  { %v1502_v14 = vpop.f32.mrf.mxu3 }
  0x9c   :  { %v1504_v15 = vpop.f32.mrf.mxu3 }
  0x9e   :  { %v121_v16 = vpop.f32.mrf.mxu0 }
  0x9f   :  { %v125_v17 = vmul.f32 0.0625, %v121_v16  ;;  %v200_v16 = vld [vmem:[%s1882_s1 + $0x38] sm:$0xff] }
  0xa1   :  { %v126_v18 = vpack.c.bf16 %v125_v17, %v125_v17 }
  0xa3   :  { %1189 = vmatmul.msk.bf16.vlgmr.msra.gmra.mxu1 %vm147_vm0, %v126_v18  ;;  %1198 = vmatmul.msk.bf16.vlgmr.msra.gmra.mxu2 %vm147_vm0, %v126_v18  ;;  %v195_v18 = vld [vmem:[%s1882_s1 + $0x10] sm:$0xff] }
  0xa4   :  { %v249_v19 = vpop.f32.mrf.mxu3 }
  0xa5   :  { %v1584_v52 = vadd.f32 %v249_v19, %v196_v51  ;;  %v1299_v19 = vld [vmem:[%s1892_s11 + $0x28] sm:$0xff] }
  0xa6   :  { %v123_v20 = vpop.f32.mrf.mxu0 }
  0xa7   :  { %v248_v20 = vadd.f32 %v1504_v15, %v195_v18  ;;  %v1301_v15 = vld [vmem:[%s1892_s11 + $0x38] sm:$0xff] }
  0xac   :  { %v252_v21 = vpop.f32.mrf.mxu3 }
  0xad   :  { %v1571_v48 = vadd.f32 %v252_v21, %v197_v47  ;;  %v194_v21 = vld [vmem:[%s1882_s1 + $0x8] sm:$0xff] }
  0xb4   :  { %v254_v22 = vpop.f32.mrf.mxu3 }
  0xb5   :  { %v1546_v40 = vadd.f32 %v254_v22, %v198_v38  ;;  %v245_v22 = vadd.f32 %v1502_v14, %v194_v21 }
  0xbc   :  { %v257_v23 = vpop.f32.mrf.mxu3 }
  0xbd   :  { %v1532_v35 = vadd.f32 %v257_v23, %v199_v33  ;;  %v1300_v23 = vld [vmem:[%s1892_s11 + $0x30] sm:$0xff] }
  0xc4   :  { %v1508_v24 = vpop.f32.mrf.mxu3 }
  0xc5   :  { %v260_v17 = vadd.f32 %v1508_v24, %v200_v16 }
  0xcc   :  { %v1510_v25 = vpop.f32.mrf.mxu3 }
  0xcd   :  { %v263_v13 = vadd.f32 %v1510_v25, %v201_v11 }
  0xd4   :  { %v264_v26 = vpop.f32.mrf.mxu3 }
  0xd5   :  { %v1562_v46 = vadd.f32 %v264_v26, %v202_v44 }
  0xdc   :  { %v267_v28 = vpop.f32.mrf.mxu3 }
  0xdd   :  { %v1515_v29 = vadd.f32 %v267_v28, %v203_v27 }
  0xdf   :  { %1008 = vrot.lane.b32.xlu2 %v1515_v29, %s1388_s28 }
  0xe4   :  { %v269_v31 = vpop.f32.mrf.mxu3 }
  0xe5   :  { %v1522_v32 = vadd.f32 %v269_v31, %v204_v30 }
  0xe7   :  { %1010 = vrot.lane.b32.xlu2 %v1522_v32, %s1388_s28 }
  0xec   :  { %v272_v36 = vpop.f32.mrf.mxu3 }
  0xed   :  { %v1534_v37 = vadd.f32 %v272_v36, %v205_v34 }
  0xef   :  { %1012 = vrot.lane.b32.xlu1 %v1534_v37, %s1388_s28  ;;  %1000 = vrot.lane.b32.xlu2 %v1532_v35, %s1388_s28 }
  0xf4   :  { %v274_v41 = vpop.f32.mrf.mxu3 }
  0xf5   :  { %v1548_v42 = vadd.f32 %v274_v41, %v206_v39 }
  0xf7   :  { %1014 = vrot.lane.b32.xlu1 %v1548_v42, %s1388_s28  ;;  %998 = vrot.lane.b32.xlu2 %v1546_v40, %s1388_s28 }
  0xfc   :  { %v277_v6 = vpop.f32.mrf.mxu3 }
  0xfd   :  { %v1615_v7 = vadd.f32 %v277_v6, %v207_v5 }
  0xff   :  { %1006 = vrot.lane.b32.xlu1 %v1562_v46, %s1388_s28  ;;  %988 = vrot.lane.b32.xlu2 %v1560_v45, %s1388_s28 }
 0x100   :  { %1016 = vrot.lane.b32.xlu0 %v1615_v7, %s1388_s28 }
 0x104   :  { %v279_v9 = vpop.f32.mrf.mxu3 }
 0x105   :  { %v1622_v10 = vadd.f32 %v279_v9, %v208_v8 }
 0x107   :  { %996 = vrot.lane.b32.xlu1 %v1571_v48, %s1388_s28 }
 0x108   :  { %1018 = vrot.lane.b32.xlu0 %v1622_v10, %s1388_s28 }
 0x10f   :  { %994 = vrot.lane.b32.xlu1 %v1584_v52, %s1388_s28 }
 0x110   :  { %1004 = vrot.lane.b32.xlu0 %v263_v13, %s1388_s28 }
 0x118   :  { %1002 = vrot.lane.b32.xlu0 %v260_v17, %s1388_s28 }
 0x120   :  { %v160_v54 = vpop.f32.mrf.mxu1  ;;  %992 = vrot.lane.b32.xlu0 %v248_v20, %s1388_s28 }
 0x121   :  { %v161_v55 = vadd.f32 %v1308_v53, %v160_v54 }
 0x123   :  { %v298_v57 = vpack.c.bf16 %v161_v55, %v161_v55 }
 0x125   :  { %v366_v58 = vsel %vm364_vm1, %v298_v57, 0 }
 0x126   :  { %v189_v60 = vpop.f32.mrf.mxu2  ;;  %375 = vmatpush.bf16.msrb.mxu1 %v366_v58 }
 0x127   :  { %v190_v61 = vadd.f32 %v1309_v56, %v189_v60 }
 0x128   :  { %v162_v62 = vpop.f32.mrf.mxu1  ;;  %990 = vrot.lane.b32.xlu0 %v245_v22, %s1388_s28 }
 0x129   :  { %v530_v63 = vmul.f32 %v190_v61, %v161_v55  ;;  %1078 = vrot.lane.b32.xlu1 %v190_v61, %s1388_s28  ;;  %1239 = vmatmul.msk.bf16.vlgmr.msrb.gmra.mxu1 %vm339_vm2, %v1294_v59 }
 0x12b   :  { %v531_v0 = vpack.c.bf16 %v530_v63, %v530_v63 }
 0x12d   :  { %1263 = vmatmul.msk.bf16.vlgmr.msrb.gmra.mxu3 %vm147_vm0, %v531_v0 }
 0x12e   :  { %v191_v1 = vpop.f32.mrf.mxu2 }
 0x139   :  { %1240 = vmatmul.msk.bf16.gmra.mxu1 %vm339_vm2, %v1295_v2 }
 0x149   :  { %1241 = vmatmul.msk.bf16.gmra.mxu1 %vm339_vm2, %v1296_v3 }
 0x159   :  { %1242 = vmatmul.msk.bf16.gmra.mxu1 %vm339_vm2, %v1297_v4 }
 0x169   :  { %1243 = vmatmul.msk.bf16.gmra.mxu1 %vm339_vm2, %v1298_v12 }
 0x179   :  { %1244 = vmatmul.msk.bf16.gmra.mxu1 %vm339_vm2, %v1299_v19 }
 0x189   :  { %1245 = vmatmul.msk.bf16.gmra.mxu1 %vm339_vm2, %v1300_v23 }
 0x199   :  { %1246 = vmatmul.msk.bf16.gmra.mxu1 %vm339_vm2, %v1301_v15 }
 0x1a6   :  { %v377_v24 = vpop.f32.mrf.mxu1 }
 0x1a7   :  { %v421_v26 = vmul.f32 %v377_v24, %v1560_v45 }
 0x1ae   :  { %v379_v25 = vpop.f32.mrf.mxu1 }
 0x1af   :  { %v422_v27 = vmul.f32 %v379_v25, %v245_v22 }
 0x1b0   :  { %v1663_v14 = vpop.f32.mrf.mxu3 }
 0x1b1   :  { %v437_v28 = vpack.c.bf16 %v422_v27, %v421_v26 }
 0x1b3   :  { %1255 = vmatmul.msk.bf16.vlgmr.msrb.gmra.mxu2 %vm147_vm0, %v437_v28 }
 0x1b6   :  { %v382_v30 = vpop.f32.mrf.mxu1 }
 0x1b7   :  { %v423_v34 = vmul.f32 %v382_v30, %v248_v20 }
 0x1b8   :  { %v546_v31 = vpop.f32.mrf.mxu3 }
 0x1be   :  { %v384_v33 = vpop.f32.mrf.mxu1 }
 0x1bf   :  { %v424_v36 = vmul.f32 %v384_v33, %v1584_v52 }
 0x1c1   :  { %v438_v38 = vpack.c.bf16 %v424_v36, %v423_v34  ;;  %v622_v34 = vrot.slane %v1663_v14, 1 }
 0x1c3   :  { %1256 = vmatmul.msk.bf16.gmra.mxu2 %vm147_vm0, %v438_v38 }
 0x1c6   :  { %v387_v39 = vpop.f32.mrf.mxu1 }
 0x1c7   :  { %v425_v43 = vmul.f32 %v387_v39, %v1571_v48 }
 0x1ce   :  { %v389_v41 = vpop.f32.mrf.mxu1 }
 0x1cf   :  { %v426_v44 = vmul.f32 %v389_v41, %v1546_v40 }
 0x1d1   :  { %v439_v45 = vpack.c.bf16 %v426_v44, %v425_v43 }
 0x1d3   :  { %1257 = vmatmul.msk.bf16.gmra.mxu2 %vm147_vm0, %v439_v45 }
 0x1d6   :  { %v392_v47 = vpop.f32.mrf.mxu1 }
 0x1d7   :  { %v427_v50 = vmul.f32 %v392_v47, %v1532_v35 }
 0x1de   :  { %v394_v49 = vpop.f32.mrf.mxu1 }
 0x1df   :  { %v428_v51 = vmul.f32 %v394_v49, %v260_v17 }
 0x1e1   :  { %v440_v53 = vpack.c.bf16 %v428_v51, %v427_v50 }
 0x1e3   :  { %1258 = vmatmul.msk.bf16.gmra.mxu2 %vm147_vm0, %v440_v53 }
 0x1e6   :  { %v397_v52 = vpop.f32.mrf.mxu1 }
 0x1e7   :  { %v429_v55 = vmul.f32 %v397_v52, %v263_v13 }
 0x1ee   :  { %v399_v54 = vpop.f32.mrf.mxu1 }
 0x1ef   :  { %v430_v56 = vmul.f32 %v399_v54, %v1562_v46 }
 0x1f1   :  { %v441_v57 = vpack.c.bf16 %v430_v56, %v429_v55 }
 0x1f3   :  { %1259 = vmatmul.msk.bf16.gmra.mxu2 %vm147_vm0, %v441_v57 }
 0x1f6   :  { %v402_v40 = vpop.f32.mrf.mxu1 }
 0x1f7   :  { %v431_v58 = vmul.f32 %v402_v40, %v1515_v29 }
 0x1fe   :  { %v404_v48 = vpop.f32.mrf.mxu1 }
 0x1ff   :  { %v432_v59 = vmul.f32 %v404_v48, %v1522_v32 }
 0x201   :  { %v442_v60 = vpack.c.bf16 %v432_v59, %v431_v58 }
 0x203   :  { %1260 = vmatmul.msk.bf16.gmra.mxu2 %vm147_vm0, %v442_v60 }
 0x206   :  { %v407_v35 = vpop.f32.mrf.mxu1 }
 0x207   :  { %v433_v62 = vmul.f32 %v407_v35, %v1534_v37 }
 0x20e   :  { %v409_v61 = vpop.f32.mrf.mxu1 }
 0x20f   :  { %v434_v63 = vmul.f32 %v409_v61, %v1548_v42 }
 0x211   :  { %v443_v0 = vpack.c.bf16 %v434_v63, %v433_v62  ;;  %v623_v62 = vrot.slane %v1663_v14, 2 }
 0x213   :  { %1261 = vmatmul.msk.bf16.gmra.mxu2 %vm147_vm0, %v443_v0 }
 0x216   :  { %v412_v46 = vpop.f32.mrf.mxu1 }
 0x217   :  { %v435_v2 = vmul.f32 %v412_v46, %v1615_v7 }
 0x21e   :  { %v414_v1 = vpop.f32.mrf.mxu1 }
 0x21f   :  { %v436_v29 = vmul.f32 %v414_v1, %v1622_v10 }
 0x221   :  { %v444_v3 = vpack.c.bf16 %v436_v29, %v435_v2 }
 0x223   :  { %1262 = vmatmul.msk.bf16.gmra.mxu2 %vm147_vm0, %v444_v3 }
 0x236   :  { %v490_v32 = vpop.f32.mrf.mxu2 }
 0x237   :  { %v549_v5 = vsel %vm548_vm3, %v490_v32, -inf }
 0x23e   :  { %v492_v4 = vpop.f32.mrf.mxu2 }
 0x23f   :  { %v550_v37 = vsel %vm548_vm3, %v492_v4, -inf }
 0x240   :  { %v551_v42 = vmax.f32 %v549_v5, %v550_v37 }
 0x242   :  { %v552_v6 = vrot.slane %v551_v42, 4 }
 0x244   :  { %v553_v8 = vmax.f32 %v551_v42, %v552_v6 }
 0x246   :  { %v554_v9 = vrot.slane %v553_v8, 2  ;;  %v495_v11 = vpop.f32.mrf.mxu2 }
 0x247   :  { %v558_v17 = vsel %vm548_vm3, %v495_v11, -inf }
 0x248   :  { %v555_v12 = vmax.f32 %v553_v8, %v554_v9 }
 0x24a   :  { %v556_v13 = vrot.slane %v555_v12, 1 }
 0x24c   :  { %v557_v7 = vmax.f32 %v555_v12, %v556_v13 }
 0x24e   :  { %v637_v10 = vmax.f32 %v557_v7, %v1663_v14  ;;  %v497_v16 = vpop.f32.mrf.mxu2 }
 0x24f   :  { %v559_v18 = vsel %vm548_vm3, %v497_v16, -inf }
 0x250   :  { %v645_v19 = vperm.slane %v637_v10, 0  ;;  %v560_v20 = vmax.f32 %v558_v17, %v559_v18 }
 0x252   :  { %v653_v21 = vsub.f32 %v490_v32, %v645_v19  ;;  %v654_v22 = vsub.f32 %v492_v4, %v645_v19  ;;  %v561_v23 = vrot.slane %v560_v20, 4 }
 0x254   :  { %v669_v15 = vmul.f32 1.442695, %v653_v21  ;;  %v671_v24 = vmul.f32 1.442695, %v654_v22  ;;  %v562_v25 = vmax.f32 %v560_v20, %v561_v23  ;;  %v624_v20 = vrot.slane %v1663_v14, 3 }
 0x256   :  { %1311 = vpow2.f32 %v669_v15  ;;  %v563_v26 = vrot.slane %v562_v25, 2  ;;  %v500_v27 = vpop.f32.mrf.mxu2 }
 0x257   :  { %1313 = vpow2.f32 %v671_v24  ;;  %v567_v45 = vsel %vm548_vm3, %v500_v27, -inf }
 0x258   :  { %v564_v28 = vmax.f32 %v562_v25, %v563_v26 }
 0x25a   :  { %v565_v30 = vrot.slane %v564_v28, 1 }
 0x25c   :  { %v1689_v31 = vpop.eup %1311  ;;  %v566_v33 = vmax.f32 %v564_v28, %v565_v30 }
 0x25d   :  { %v1692_v36 = vpop.eup %1313  ;;  %v734_v38 = vsel %vm548_vm3, %v1689_v31, 0.0 }
 0x25e   :  { %v735_v39 = vsel %vm548_vm3, %v1692_v36, 0.0  ;;  %v638_v41 = vmax.f32 %v566_v33, %v622_v34  ;;  %v502_v43 = vpop.f32.mrf.mxu2 }
 0x25f   :  { %v1698_v44 = vadd.f32 %v735_v39, %v734_v38  ;;  %v568_v47 = vsel %vm548_vm3, %v502_v43, -inf }
 0x260   :  { %v646_v49 = vperm.slane %v638_v41, 0  ;;  %v709_v50 = vrot.slane %v638_v41, 7  ;;  %v569_v51 = vmax.f32 %v567_v45, %v568_v47 }
 0x262   :  { %v655_v53 = vsub.f32 %v495_v11, %v646_v49  ;;  %v656_v52 = vsub.f32 %v497_v16, %v646_v49  ;;  %v711_v54 = vsel %vm710_vm4, %v709_v50, %v637_v10  ;;  %v570_v55 = vrot.slane %v569_v51, 4 }
 0x264   :  { %v673_v56 = vmul.f32 1.442695, %v655_v53  ;;  %v675_v57 = vmul.f32 1.442695, %v656_v52  ;;  %v571_v40 = vmax.f32 %v569_v51, %v570_v55 }
 0x266   :  { %1315 = vpow2.f32 %v673_v56  ;;  %v572_v48 = vrot.slane %v571_v40, 2  ;;  %v505_v58 = vpop.f32.mrf.mxu2 }
 0x267   :  { %1317 = vpow2.f32 %v675_v57  ;;  %v576_v3 = vsel %vm548_vm3, %v505_v58, -inf }
 0x268   :  { %v573_v59 = vmax.f32 %v571_v40, %v572_v48 }
 0x26a   :  { %v574_v60 = vrot.slane %v573_v59, 1 }
 0x26c   :  { %v1703_v35 = vpop.eup %1315  ;;  %v575_v61 = vmax.f32 %v573_v59, %v574_v60 }
 0x26d   :  { %v1706_v63 = vpop.eup %1317  ;;  %v743_v0 = vsel %vm548_vm3, %v1703_v35, 0.0 }
 0x26e   :  { %v744_v46 = vsel %vm548_vm3, %v1706_v63, 0.0  ;;  %v639_v1 = vmax.f32 %v575_v61, %v623_v62  ;;  %v507_v2 = vpop.f32.mrf.mxu2 }
 0x26f   :  { %v1712_v29 = vadd.f32 %v744_v46, %v743_v0  ;;  %v577_v32 = vsel %vm548_vm3, %v507_v2, -inf  ;;  %v625_v0 = vrot.slane %v1663_v14, 4 }
 0x270   :  { %v647_v4 = vperm.slane %v639_v1, 0  ;;  %v712_v5 = vrot.slane %v639_v1, 6  ;;  %v578_v37 = vmax.f32 %v576_v3, %v577_v32 }
 0x272   :  { %v657_v42 = vsub.f32 %v500_v27, %v647_v4  ;;  %v658_v6 = vsub.f32 %v502_v43, %v647_v4  ;;  %v714_v8 = vsel %vm713_vm5, %v712_v5, %v711_v54  ;;  %v579_v9 = vrot.slane %v578_v37, 4 }
 0x274   :  { %v677_v11 = vmul.f32 1.442695, %v657_v42  ;;  %v679_v12 = vmul.f32 1.442695, %v658_v6  ;;  %v580_v13 = vmax.f32 %v578_v37, %v579_v9  ;;  %v626_v37 = vrot.slane %v1663_v14, 5 }
 0x276   :  { %1319 = vpow2.f32 %v677_v11  ;;  %v581_v7 = vrot.slane %v580_v13, 2  ;;  %v510_v10 = vpop.f32.mrf.mxu2 }
 0x277   :  { %1321 = vpow2.f32 %v679_v12  ;;  %v585_v26 = vsel %vm548_vm3, %v510_v10, -inf }
 0x278   :  { %v582_v16 = vmax.f32 %v580_v13, %v581_v7 }
 0x27a   :  { %v583_v17 = vrot.slane %v582_v16, 1 }
 0x27c   :  { %v1717_v18 = vpop.eup %1319  ;;  %v584_v19 = vmax.f32 %v582_v16, %v583_v17 }
 0x27d   :  { %v1720_v21 = vpop.eup %1321  ;;  %v752_v22 = vsel %vm548_vm3, %v1717_v18, 0.0 }
 0x27e   :  { %v753_v23 = vsel %vm548_vm3, %v1720_v21, 0.0  ;;  %v640_v15 = vmax.f32 %v584_v19, %v624_v20  ;;  %v512_v24 = vpop.f32.mrf.mxu2 }
 0x27f   :  { %v1726_v25 = vadd.f32 %v753_v23, %v752_v22  ;;  %v586_v27 = vsel %vm548_vm3, %v512_v24, -inf }
 0x280   :  { %v648_v28 = vperm.slane %v640_v15, 0  ;;  %v715_v30 = vrot.slane %v640_v15, 5  ;;  %v587_v33 = vmax.f32 %v585_v26, %v586_v27 }
 0x282   :  { %v659_v34 = vsub.f32 %v505_v58, %v648_v28  ;;  %v660_v38 = vsub.f32 %v507_v2, %v648_v28  ;;  %v1731_v39 = vsel %vm716_vm6, %v715_v30, %v714_v8  ;;  %v588_v41 = vrot.slane %v587_v33, 4 }
 0x284   :  { %v681_v43 = vmul.f32 1.442695, %v659_v34  ;;  %v683_v45 = vmul.f32 1.442695, %v660_v38  ;;  %v589_v47 = vmax.f32 %v587_v33, %v588_v41 }
 0x286   :  { %1323 = vpow2.f32 %v681_v43  ;;  %v515_v49 = vpop.f32.mrf.mxu2  ;;  %v590_v50 = vrot.slane %v589_v47, 2 }
 0x287   :  { %1325 = vpow2.f32 %v683_v45  ;;  %v594_v40 = vsel %vm548_vm3, %v515_v49, -inf }
 0x288   :  { %v591_v53 = vmax.f32 %v589_v47, %v590_v50 }
 0x28a   :  { %v592_v58 = vrot.slane %v591_v53, 1 }
 0x28c   :  { %v1733_v51 = vpop.eup %1323  ;;  %v593_v61 = vmax.f32 %v591_v53, %v592_v58 }
 0x28d   :  { %v1735_v52 = vpop.eup %1325  ;;  %v761_v54 = vsel %vm548_vm3, %v1733_v51, 0.0 }
 0x28e   :  { %v762_v55 = vsel %vm548_vm3, %v1735_v52, 0.0  ;;  %v517_v56 = vpop.f32.mrf.mxu2  ;;  %v1746_v2 = vmax.f32 %v593_v61, %v625_v0 }
 0x28f   :  { %v1741_v57 = vadd.f32 %v762_v55, %v761_v54  ;;  %v595_v48 = vsel %vm548_vm3, %v517_v56, -inf }
 0x290   :  { %v596_v59 = vmax.f32 %v594_v40, %v595_v48  ;;  %v649_v4 = vperm.slane %v1746_v2, 0  ;;  %v737_v48 = vrot.slane %v1698_v44, 4 }
 0x292   :  { %v597_v60 = vrot.slane %v596_v59, 4  ;;  %v661_v11 = vsub.f32 %v510_v10, %v649_v4  ;;  %v662_v7 = vsub.f32 %v512_v24, %v649_v4  ;;  %v627_v24 = vrot.slane %v1663_v14, 6 }
 0x293   :  { %v746_v4 = vrot.slane %v1712_v29, 4 }
 0x294   :  { %v598_v62 = vmax.f32 %v596_v59, %v597_v60  ;;  %v685_v20 = vmul.f32 1.442695, %v661_v11  ;;  %v687_v23 = vmul.f32 1.442695, %v662_v7 }
 0x296   :  { %v599_v46 = vrot.slane %v598_v62, 2  ;;  %v520_v1 = vpop.f32.mrf.mxu2  ;;  %1327 = vpow2.f32 %v685_v20 }
 0x297   :  { %v603_v8 = vsel %vm548_vm3, %v520_v1, -inf  ;;  %1329 = vpow2.f32 %v687_v23 }
 0x298   :  { %v600_v3 = vmax.f32 %v598_v62, %v599_v46 }
 0x29a   :  { %v601_v32 = vrot.slane %v600_v3, 1 }
 0x29c   :  { %v602_v5 = vmax.f32 %v600_v3, %v601_v32  ;;  %v1758_v34 = vpop.eup %1327  ;;  %v738_v32 = vadd.f32 %v737_v48, %v1698_v44 }
 0x29d   :  { %v1764_v43 = vpop.eup %1329  ;;  %v770_v58 = vsel %vm548_vm3, %v1758_v34, 0.0 }
 0x29e   :  { %v1750_v42 = vmax.f32 %v602_v5, %v626_v37  ;;  %v522_v6 = vpop.f32.mrf.mxu2  ;;  %v771_v59 = vsel %vm548_vm3, %v1764_v43, 0.0  ;;  %v755_v37 = vrot.slane %v1726_v25, 4  ;;  %v739_v44 = vrot.slane %v738_v32, 2 }
 0x29f   :  { %v604_v9 = vsel %vm548_vm3, %v522_v6, -inf }
 0x2a0   :  { %v650_v12 = vperm.slane %v1750_v42, 0  ;;  %v605_v13 = vmax.f32 %v603_v8, %v604_v9  ;;  %v764_v8 = vrot.slane %v1741_v57, 4  ;;  %v886_v9 = vld [vmem:[%s1890_s9] sm:$0x3]  ;;  %v721_v23 = vrot.slane %v1750_v42, 3 }
 0x2a1   :  { %v921_v7 = vsel %vm919_vm7, %v886_v9, 0 }
 0x2a2   :  { %v663_v16 = vsub.f32 %v515_v49, %v650_v12  ;;  %v606_v17 = vrot.slane %v605_v13, 4  ;;  %v664_v19 = vsub.f32 %v517_v56, %v650_v12  ;;  %930 = vmatpush.bf16.msrb.mxu0 %v921_v7  ;;  %1071 = vmatpush.bf16.msra.mxu3 %v921_v7 }
 0x2a4   :  { %v607_v22 = vmax.f32 %v605_v13, %v606_v17  ;;  %v689_v15 = vmul.f32 1.442695, %v663_v16  ;;  %v691_v28 = vmul.f32 1.442695, %v664_v19  ;;  %v628_v13 = vrot.slane %v1663_v14, 7 }
 0x2a5   :  { %v747_v16 = vadd.f32 %v746_v4, %v1712_v29  ;;  %v718_v17 = vrot.slane %v1746_v2, 4 }
 0x2a6   :  { %v608_v26 = vrot.slane %v607_v22, 2  ;;  %v1755_v27 = vpop.f32.mrf.mxu2  ;;  %1331 = vpow2.f32 %v689_v15 }
 0x2a7   :  { %1333 = vpow2.f32 %v691_v28  ;;  %v612_v45 = vsel %vm548_vm3, %v1755_v27, -inf  ;;  %v765_v28 = vadd.f32 %v764_v8, %v1741_v57  ;;  %v720_v42 = vsel %vm719_vm8, %v718_v17, %v1731_v39 }
 0x2a8   :  { %v609_v30 = vmax.f32 %v607_v22, %v608_v26  ;;  %v756_v22 = vadd.f32 %v755_v37, %v1726_v25  ;;  %v723_v57 = vsel %vm722_vm9, %v721_v23, %v720_v42 }
 0x2aa   :  { %v610_v10 = vrot.slane %v609_v30, 1 }
 0x2ac   :  { %v611_v33 = vmax.f32 %v609_v30, %v610_v10  ;;  %v1770_v49 = vpop.eup %1331 }
 0x2ad   :  { %v1773_v54 = vpop.eup %1333  ;;  %v779_v60 = vsel %vm548_vm3, %v1770_v49, 0.0 }
 0x2ae   :  { %v1760_v38 = vmax.f32 %v611_v33, %v627_v24  ;;  %v1762_v41 = vpop.f32.mrf.mxu2  ;;  %v780_v61 = vsel %vm548_vm3, %v1773_v54, 0.0 }
 0x2af   :  { %v613_v47 = vsel %vm548_vm3, %v1762_v41, -inf  ;;  %v781_v5 = vadd.f32 %v780_v61, %v779_v60 }
 0x2b0   :  { %v651_v50 = vperm.slane %v1760_v38, 0  ;;  %v614_v53 = vmax.f32 %v612_v45, %v613_v47  ;;  %v724_v29 = vrot.slane %v1760_v38, 2  ;;  %v748_v45 = vrot.slane %v747_v16, 2 }
 0x2b1   :  { %v782_v19 = vrot.slane %v781_v5, 4 }
 0x2b2   :  { %v665_v55 = vsub.f32 %v520_v1, %v651_v50  ;;  %v666_v56 = vsub.f32 %v522_v6, %v651_v50  ;;  %v615_v40 = vrot.slane %v614_v53, 4  ;;  %v772_v1 = vadd.f32 %v771_v59, %v770_v58 }
 0x2b3   :  { %v783_v33 = vadd.f32 %v782_v19, %v781_v5  ;;  %v757_v50 = vrot.slane %v756_v22, 2 }
 0x2b4   :  { %v693_v62 = vmul.f32 1.442695, %v665_v55  ;;  %v695_v0 = vmul.f32 1.442695, %v666_v56  ;;  %v616_v46 = vmax.f32 %v614_v53, %v615_v40  ;;  %v773_v11 = vrot.slane %v772_v1, 4 }
 0x2b5   :  { %v766_v53 = vrot.slane %v765_v28, 2  ;;  %v726_v55 = vsel %vm725_vm10, %v724_v29, %v723_v57  ;;  %v784_v59 = vrot.slane %v783_v33, 2 }
 0x2b6   :  { %1335 = vpow2.f32 %v693_v62  ;;  %v617_v3 = vrot.slane %v616_v46, 2  ;;  %v774_v30 = vadd.f32 %v773_v11, %v772_v1  ;;  %v749_v1 = vadd.f32 %v748_v45, %v747_v16 }
 0x2b7   :  { %1337 = vpow2.f32 %v695_v0  ;;  %v767_v5 = vadd.f32 %v766_v53, %v765_v28  ;;  %v785_v8 = vadd.f32 %v784_v59, %v783_v33 }
 0x2b8   :  { %v618_v6 = vmax.f32 %v616_v46, %v617_v3  ;;  %v775_v40 = vrot.slane %v774_v30, 2  ;;  %v740_v46 = vadd.f32 %v739_v44, %v738_v32  ;;  %v758_v3 = vadd.f32 %v757_v50, %v756_v22 }
 0x2b9   :  { %v768_v11 = vrot.slane %v767_v5, 1 }
 0x2ba   :  { %v619_v12 = vrot.slane %v618_v6, 1  ;;  %v776_v37 = vadd.f32 %v775_v40, %v774_v30  ;;  %v759_v9 = vrot.slane %v758_v3, 1 }
 0x2bb   :  { %v769_v23 = vadd.f32 %v768_v11, %v767_v5 }
 0x2bc   :  { %v1794_v20 = vpop.eup %1335  ;;  %v620_v15 = vmax.f32 %v618_v6, %v619_v12  ;;  %v777_v12 = vrot.slane %v776_v37, 1  ;;  %v760_v17 = vadd.f32 %v759_v9, %v758_v3 }
 0x2bd   :  { %v1798_v26 = vpop.eup %1337  ;;  %v788_v2 = vsel %vm548_vm3, %v1794_v20, 0.0 }
 0x2be   :  { %v789_v10 = vsel %vm548_vm3, %v1798_v26, 0.0  ;;  %v644_v25 = vmax.f32 %v620_v15, %v628_v13  ;;  %v778_v15 = vadd.f32 %v777_v12, %v776_v37 }
 0x2bf   :  { %v790_v24 = vadd.f32 %v789_v10, %v788_v2 }
 0x2c0   :  { %v652_v47 = vperm.slane %v644_v25, 0  ;;  %v727_v38 = vrot.slane %v644_v25, 1 }
 0x2c1   :  { %v791_v56 = vrot.slane %v790_v24, 4 }
 0x2c2   :  { %v667_v48 = vsub.f32 %v1755_v27, %v652_v47  ;;  %v668_v58 = vsub.f32 %v1762_v41, %v652_v47  ;;  %v729_v39 = vsel %vm728_vm11, %v727_v38, %v726_v55  ;;  %v741_v27 = vrot.slane %v740_v46, 1 }
 0x2c3   :  { %v792_v60 = vadd.f32 %v791_v56, %v790_v24  ;;  %v731_v61 = vsub.f32 %v1663_v14, %v729_v39  ;;  %v750_v41 = vrot.slane %v749_v1, 1  ;;  %v786_v14 = vrot.slane %v785_v8, 1 }
 0x2c4   :  { %v697_v62 = vmul.f32 1.442695, %v667_v48  ;;  %v699_v0 = vmul.f32 1.442695, %v668_v58  ;;  %v742_v44 = vadd.f32 %v741_v27, %v740_v46 }
 0x2c5   :  { %v732_v4 = vmul.f32 1.442695, %v731_v61  ;;  %v793_v6 = vrot.slane %v792_v60, 2  ;;  %v751_v16 = vadd.f32 %v750_v41, %v749_v1  ;;  %v787_v2 = vadd.f32 %v786_v14, %v785_v8 }
 0x2c6   :  { %1339 = vpow2.f32 %v697_v62 }
 0x2c7   :  { %1341 = vpow2.f32 %v699_v0  ;;  %v794_v13 = vadd.f32 %v793_v6, %v792_v60 }
 0x2c8   :  { %1343 = vpow2.f32 %v732_v4 }
 0x2c9   :  { %v795_v28 = vrot.slane %v794_v13, 1 }
 0x2cb   :  { %v796_v50 = vadd.f32 %v795_v28, %v794_v13 }
 0x2cc   :  { %v1814_v7 = vpop.eup %1339 }
 0x2cd   :  { %v1816_v32 = vpop.eup %1341  ;;  %v797_v19 = vsel %vm548_vm3, %v1814_v7, 0.0 }
 0x2ce   :  { %v1820_v22 = vpop.eup %1343  ;;  %v798_v29 = vsel %vm548_vm3, %v1816_v32, 0.0 }
 0x2cf   :  { %v799_v30 = vadd.f32 %v798_v29, %v797_v19  ;;  %v822_v10 = vadd.f32 %v1820_v22, %v742_v44  ;;  %v807_v25 = vrot.slane %v1820_v22, 1  ;;  %v808_v42 = vrot.slane %v1820_v22, 2 }
 0x2d0   :  { %v809_v33 = vrot.slane %v1820_v22, 3  ;;  %v810_v24 = vrot.slane %v1820_v22, 4  ;;  %v811_v45 = vrot.slane %v1820_v22, 5  ;;  %v812_v47 = vrot.slane %v1820_v22, 6 }
 0x2d1   :  { %v800_v57 = vrot.slane %v799_v30, 4  ;;  %1345 = vrcp.f32 %v822_v10  ;;  %v823_v38 = vadd.f32 %v807_v25, %v751_v16  ;;  %v824_v53 = vadd.f32 %v808_v42, %v760_v17 }
 0x2d2   :  { %v825_v55 = vadd.f32 %v809_v33, %v769_v23  ;;  %v826_v56 = vadd.f32 %v810_v24, %v778_v15  ;;  %v827_v48 = vadd.f32 %v811_v45, %v787_v2  ;;  %v828_v58 = vadd.f32 %v812_v47, %v796_v50 }
 0x2d3   :  { %v801_v40 = vadd.f32 %v800_v57, %v799_v30  ;;  %1347 = vrcp.f32 %v823_v38  ;;  %v813_v8 = vrot.slane %v1820_v22, 7 }
 0x2d4   :  { %1349 = vrcp.f32 %v824_v53 }
 0x2d5   :  { %v802_v39 = vrot.slane %v801_v40, 2  ;;  %1351 = vrcp.f32 %v825_v55 }
 0x2d6   :  { %1353 = vrcp.f32 %v826_v56 }
 0x2d7   :  { %v1346_v59 = vpop.eup %1345  ;;  %v803_v60 = vadd.f32 %v802_v39, %v801_v40  ;;  %1355 = vrcp.f32 %v827_v48 }
 0x2d8   :  { %v838_v61 = vperm.slane %v1346_v59, 0  ;;  %1357 = vrcp.f32 %v828_v58 }
 0x2d9   :  { %v1348_v62 = vpop.eup %1347  ;;  %v804_v0 = vrot.slane %v803_v60, 1 }
 0x2da   :  { %v1350_v46 = vpop.eup %1349  ;;  %v846_v1 = vmul.f32 %v1689_v31, %v838_v61  ;;  %v847_v3 = vmul.f32 %v1692_v36, %v838_v61  ;;  %v870_v4 = vrot.slane %v1348_v62, 7  ;;  %v839_v5 = vperm.slane %v1348_v62, 0 }
 0x2db   :  { %v1352_v37 = vpop.eup %1351  ;;  %v805_v6 = vadd.f32 %v804_v0, %v803_v60  ;;  %v872_v27 = vrot.slane %v1350_v46, 6  ;;  %v840_v41 = vperm.slane %v1350_v46, 0  ;;  %v1013_v0 = vpop.permute.xlu1 %1012 }
 0x2dc   :  { %v1354_v9 = vpop.eup %1353  ;;  %v887_v11 = vpack.c.bf16 %v847_v3, %v846_v1  ;;  %v871_v12 = vsel %vm710_vm4, %v870_v4, %v1346_v59  ;;  %v874_v13 = vrot.slane %v1352_v37, 5  ;;  %v848_v14 = vmul.f32 %v1703_v35, %v839_v5 }
 0x2dd   :  { %v1356_v44 = vpop.eup %1355  ;;  %v829_v16 = vadd.f32 %v813_v8, %v805_v6  ;;  %v873_v31 = vsel %vm713_vm5, %v872_v27, %v871_v12  ;;  %v876_v36 = vrot.slane %v1354_v9, 4  ;;  %v849_v17 = vmul.f32 %v1706_v63, %v839_v5 }
 0x2de   :  { %v1358_v19 = vpop.eup %1357  ;;  %1264 = vmatmul.msk.bf16.vlgmr.msrb.gmra.mxu0 %vm548_vm3, %v887_v11  ;;  %v875_v23 = vsel %vm716_vm6, %v874_v13, %v873_v31  ;;  %v878_v15 = vrot.slane %v1356_v44, 3  ;;  %v850_v28 = vmul.f32 %v1717_v18, %v840_v41  ;;  %v851_v29 = vmul.f32 %v1720_v21, %v840_v41 }
 0x2df   :  { %1359 = vrcp.f32 %v829_v16  ;;  %v877_v35 = vsel %vm719_vm8, %v876_v36, %v875_v23  ;;  %v880_v2 = vrot.slane %v1358_v19, 2  ;;  %v888_v30 = vpack.c.bf16 %v849_v17, %v848_v14 }
 0x2e0   :  { %v879_v10 = vsel %vm722_vm9, %v878_v15, %v877_v35  ;;  %v889_v25 = vpack.c.bf16 %v851_v29, %v850_v28  ;;  %v841_v42 = vperm.slane %v1352_v37, 0  ;;  %v843_v33 = vperm.slane %v1356_v44, 0 }
 0x2e1   :  { %v881_v63 = vsel %vm725_vm10, %v880_v2, %v879_v10  ;;  %v844_v24 = vperm.slane %v1358_v19, 0 }
 0x2e2   :  { %v852_v45 = vmul.f32 %v1733_v51, %v841_v42  ;;  %v853_v57 = vmul.f32 %v1735_v52, %v841_v42  ;;  %v856_v18 = vmul.f32 %v1770_v49, %v843_v33  ;;  %v857_v21 = vmul.f32 %v1773_v54, %v843_v33 }
 0x2e3   :  { %v858_v47 = vmul.f32 %v1794_v20, %v844_v24  ;;  %v859_v38 = vmul.f32 %v1798_v26, %v844_v24  ;;  %v842_v20 = vperm.slane %v1354_v9, 0 }
 0x2e4   :  { %v890_v50 = vpack.c.bf16 %v853_v57, %v852_v45  ;;  %v892_v55 = vpack.c.bf16 %v857_v21, %v856_v18 }
 0x2e5   :  { %v1360_v53 = vpop.eup %1359  ;;  %v893_v56 = vpack.c.bf16 %v859_v38, %v858_v47  ;;  %v854_v26 = vmul.f32 %v1758_v34, %v842_v20  ;;  %v855_v59 = vmul.f32 %v1764_v43, %v842_v20  ;;  %v1015_v34 = vpop.permute.xlu1 %1014  ;;  %v1304_v20 = vld [vmem:[%s1887_s6] sm:$0xff] }
 0x2e6   :  { %v882_v40 = vrot.slane %v1360_v53, 1  ;;  %v845_v48 = vperm.slane %v1360_v53, 0 }
 0x2e8   :  { %v883_v58 = vsel %vm728_vm11, %v882_v40, %v881_v63  ;;  %v860_v51 = vmul.f32 %v1814_v7, %v845_v48  ;;  %v861_v52 = vmul.f32 %v1816_v32, %v845_v48  ;;  %v891_v7 = vpack.c.bf16 %v855_v59, %v854_v26  ;;  %v1017_v32 = vpop.permute.xlu0 %1016 }
 0x2e9   :  { %v885_v49 = vmul.f32 %v1820_v22, %v883_v58  ;;  %v1009_v22 = vpop.permute.xlu2 %1008 }
 0x2ea   :  { %v894_v39 = vpack.c.bf16 %v861_v52, %v860_v51 }
 0x2eb   :  { %v1060_v54 = vpack.c.bf16 %v885_v49, %v885_v49 }
 0x2ed   :  { %1272 = vmatmul.msk.bf16.vlgmr.msra.gmra.mxu3 %vm548_vm3, %v1060_v54  ;;  %v1007_v5 = vpop.permute.xlu1 %1006  ;;  %v1361_v54 = vld [vmem:[%s1891_s10] sm:$0xf]  ;;  %s1138_s10 = sshll.u32 %s1389_s24, 4  ;;  %s1139_s10 = int_to_ptr.vmem [resolvable:$true] %s1138_s10 }
 0x2ee   :  { %1265 = vmatmul.msk.bf16.gmra.mxu0 %vm548_vm3, %v888_v30 }
 0x2f0   :  { %v1019_v60 = vpop.permute.xlu0 %1018 }
 0x2f1   :  { %v1011_v61 = vpop.permute.xlu2 %1010 }
 0x2f5   :  { %v997_v11 = vpop.permute.xlu1 %996 }
 0x2f8   :  { %v1005_v62 = vpop.permute.xlu0 %1004 }
 0x2f9   :  { %v1001_v46 = vpop.permute.xlu2 %1000 }
 0x2fd   :  { %v995_v14 = vpop.permute.xlu1 %994 }
 0x2fe   :  { %1266 = vmatmul.msk.bf16.gmra.mxu0 %vm548_vm3, %v889_v25 }
 0x300   :  { %v1003_v1 = vpop.permute.xlu0 %1002 }
 0x301   :  { %v999_v3 = vpop.permute.xlu2 %998 }
 0x305   :  { %v1079_v26 = vpop.permute.xlu1 %1078 }
 0x308   :  { %v993_v43 = vpop.permute.xlu0 %992 }
 0x309   :  { %v989_v37 = vpop.permute.xlu2 %988 }
 0x30e   :  { %1267 = vmatmul.msk.bf16.gmra.mxu0 %vm548_vm3, %v890_v50 }
 0x310   :  { %v991_v6 = vpop.permute.xlu0 %990 }
 0x31e   :  { %1268 = vmatmul.msk.bf16.gmra.mxu0 %vm548_vm3, %v891_v7 }
 0x32e   :  { %1269 = vmatmul.msk.bf16.gmra.mxu0 %vm548_vm3, %v892_v55  ;;  %v1305_v55 = vld [vmem:[%s1887_s6 + $0x8] sm:$0xff] }
 0x32f   :  { %1125 = vmatpush.bf16.msra.mxu2 %v1305_v55 }
 0x333   :  { %1126 = vmatpush.bf16.msra.mxu2 %v1304_v20 }
 0x33e   :  { %1270 = vmatmul.msk.bf16.gmra.mxu0 %vm548_vm3, %v893_v56 }
 0x34e   :  { %1271 = vmatmul.msk.bf16.gmra.mxu0 %vm548_vm3, %v894_v39 }
 0x35b   :  { %v932_v4 = vpop.f32.mrf.mxu0 }
 0x35c   :  { %v1036_v27 = vmul.f32 %v989_v37, %v932_v4 }
 0x363   :  { %v934_v8 = vpop.f32.mrf.mxu0 }
 0x364   :  { %v1037_v41 = vmul.f32 %v991_v6, %v934_v8 }
 0x366   :  { %v1052_v9 = vpack.c.bf16 %v1037_v41, %v1036_v27 }
 0x36b   :  { %v937_v12 = vpop.f32.mrf.mxu0 }
 0x36c   :  { %v1038_v16 = vmul.f32 %v993_v43, %v937_v12 }
 0x370   :  { %v1073_v13 = vpop.f32.mrf.mxu3 }
 0x371   :  { %v1081_v59 = vmul.f32 %v1079_v26, %v1073_v13 }
 0x373   :  { %v939_v44 = vpop.f32.mrf.mxu0 }
 0x374   :  { %v1039_v31 = vmul.f32 %v995_v14, %v939_v44 }
 0x376   :  { %v1053_v36 = vpack.c.bf16 %v1039_v31, %v1038_v16 }
 0x378   :  { %v1075_v17 = vpop.f32.mrf.mxu3 }
 0x37b   :  { %v942_v19 = vpop.f32.mrf.mxu0 }
 0x37c   :  { %v1040_v15 = vmul.f32 %v997_v11, %v942_v19 }
 0x383   :  { %v944_v23 = vpop.f32.mrf.mxu0 }
 0x384   :  { %v1041_v28 = vmul.f32 %v999_v3, %v944_v23 }
 0x386   :  { %v1054_v29 = vpack.c.bf16 %v1041_v28, %v1040_v15 }
 0x38b   :  { %v947_v35 = vpop.f32.mrf.mxu0 }
 0x38c   :  { %v1042_v30 = vmul.f32 %v1001_v46, %v947_v35 }
 0x393   :  { %v949_v2 = vpop.f32.mrf.mxu0 }
 0x394   :  { %v1043_v10 = vmul.f32 %v1003_v1, %v949_v2 }
 0x396   :  { %v1055_v25 = vpack.c.bf16 %v1043_v10, %v1042_v30 }
 0x39b   :  { %v952_v42 = vpop.f32.mrf.mxu0 }
 0x39c   :  { %v1044_v49 = vmul.f32 %v1005_v62, %v952_v42 }
 0x3a3   :  { %v954_v63 = vpop.f32.mrf.mxu0 }
 0x3a4   :  { %v1045_v51 = vmul.f32 %v1007_v5, %v954_v63 }
 0x3a6   :  { %v1056_v39 = vpack.c.bf16 %v1045_v51, %v1044_v49 }
 0x3ab   :  { %v957_v33 = vpop.f32.mrf.mxu0 }
 0x3ac   :  { %v1046_v58 = vmul.f32 %v1009_v22, %v957_v33 }
 0x3b3   :  { %v959_v24 = vpop.f32.mrf.mxu0 }
 0x3b4   :  { %v1047_v40 = vmul.f32 %v1011_v61, %v959_v24  ;;  %v1310_v61 = vld [vmem:[%s1888_s7] ss:$0 sm:$0xff] }
 0x3b6   :  { %v1057_v52 = vpack.c.bf16 %v1047_v40, %v1046_v58 }
 0x3bb   :  { %v962_v45 = vpop.f32.mrf.mxu0 }
 0x3bc   :  { %v1048_v56 = vmul.f32 %v1013_v0, %v962_v45 }
 0x3c3   :  { %v964_v57 = vpop.f32.mrf.mxu0 }
 0x3c4   :  { %v1049_v50 = vmul.f32 %v1015_v34, %v964_v57 }
 0x3c6   :  { %v1058_v48 = vpack.c.bf16 %v1049_v50, %v1048_v56 }
 0x3cb   :  { %v967_v18 = vpop.f32.mrf.mxu0 }
 0x3cc   :  { %v1050_v47 = vmul.f32 %v1017_v32, %v967_v18 }
 0x3d3   :  { %v969_v21 = vpop.f32.mrf.mxu0 }
 0x3d4   :  { %v1051_v38 = vmul.f32 %v1019_v60, %v969_v21 }
 0x3d6   :  { %v1059_v53 = vpack.c.bf16 %v1051_v38, %v1050_v47 }
 0x3d8   :  { %1082 = vmatpush.bf16.msra.mxu1 %v1059_v53 }
 0x3dc   :  { %1083 = vmatpush.bf16.msra.mxu1 %v1058_v48 }
 0x3e0   :  { %1084 = vmatpush.bf16.msra.mxu1 %v1057_v52 }
 0x3e4   :  { %1085 = vmatpush.bf16.msra.mxu1 %v1056_v39 }
 0x3e8   :  { %1086 = vmatpush.bf16.msra.mxu1 %v1055_v25 }
 0x3ec   :  { %1087 = vmatpush.bf16.msra.mxu1 %v1054_v29 }
 0x3f0   :  { %1088 = vmatpush.bf16.msra.mxu1 %v1053_v36 }
 0x3f4   :  { %1089 = vmatpush.bf16.msra.mxu1 %v1052_v9 }
 0x3f7   :  { %1090 = vmatmul.bf16.vlgmr.msra.gmra.mxu1 %v1361_v54 }
 0x474   :  { %v1091_v7 = vpop.f32.mrf.mxu1 }
 0x475   :  { %v1092_v32 = vadd.f32 %v1091_v7, %v1081_v59 }
 0x477   :  { %v1095_v22 = vpack.c.bf16 %v1092_v32, %v1092_v32 }
 0x479   :  { %1281 = vmatmul.msk.bf16.vlgmr.msra.gmra.mxu2 %vm147_vm0, %v1095_v22 }
 0x47c   :  { %v1093_v60 = vpop.f32.mrf.mxu1 }
 0x4fc   :  { %v1128_v62 = vpop.f32.mrf.mxu2 }
 0x4fd   :  { %v1129_v0 = vadd.f32 %v1310_v61, %v1128_v62 }
 0x4ff   :  { %1132 = vst [vmem:[#allocation2] sm:$0xff] %v1129_v0 }
 0x500   :  { %1143 = dma.vmem_to_hbm [thread:$0]  %s1139_s10, 128, %s1141_s26, [#allocation3]  }
 0x504   :  { %v1130_v46 = vpop.f32.mrf.mxu2 }
 0x505   :  { %1386 = dma.done.wait [#allocation3], 128  }
 0x506   :  { %1387 = vsyncadd [#allocation3], 4294967168 }
 0x507   :  { %1148 = vsyncpa [#allocation3], 1 }

// kernel: tpu_custom_call.1
= control target key start
LH: loop header
LB: loop body
LE: loop exit
PB: predicated region body
PF: predicated region fallthrough
CT: control target
= control target key end

     0   :  { %s1881_s0 = inlined_call_operand.vmem [shape: bf16[128,32], index: 0, kind: input, shape index: {}]   ;;  %s1882_s1 = inlined_call_operand.vmem [shape: f32[128,64], index: 1, kind: input, shape index: {}]   ;;  %s1883_s2 = inlined_call_operand.vmem [shape: f32[1,32], index: 2, kind: input, shape index: {}]   ;;  %s1884_s3 = inlined_call_operand.vmem [shape: f32[1,64], index: 3, kind: input, shape index: {}]   ;;  %s1885_s4 = inlined_call_operand.vmem [shape: bf16[32,32], index: 4, kind: input, shape index: {}]   ;;  %s1886_s5 = inlined_call_operand.vmem [shape: bf16[32,64], index: 5, kind: input, shape index: {}]   ;;  %s1887_s6 = inlined_call_operand.vmem [shape: bf16[32,128], index: 6, kind: input, shape index: {}]   ;;  %s1888_s7 = inlined_call_operand.vmem [shape: f32[1,128], index: 7, kind: input, shape index: {}]   ;;  %s1889_s8 = inlined_call_operand.vmem [shape: bf16[32,4], index: 8, kind: input, shape index: {}]   ;;  %s1890_s9 = inlined_call_operand.vmem [shape: bf16[4,32], index: 9, kind: input, shape index: {}]   ;;  %s1891_s10 = inlined_call_operand.vmem [shape: bf16[8,128], index: 10, kind: input, shape index: {}]   ;;  %s1892_s11 = inlined_call_operand.vmem [shape: bf16[128,8], index: 11, kind: input, shape index: {}]   ;;  %s1893_s12 = inlined_call_operand.hbm [shape: f32[8,128], index: 12, kind: output, shape index: {}]  }
   0x1   :  { %v1289_v0 = vld [vmem:[%s1881_s0 + $0x38] sm:$0xff]  ;;  %v1291_v1 = vld [vmem:[%s1886_s5 + $0x8] sm:$0xff]  ;;  %v1288_v2 = vld [vmem:[%s1881_s0 + $0x30] sm:$0xff] }
   0x2   :  { %112 = vmatpush.bf16.msra.mxu0 %v1289_v0  ;;  %239 = vmatpush.bf16.msra.mxu3 %v1291_v1  ;;  %v1290_v3 = vld [vmem:[%s1886_s5] sm:$0xff] }
   0x3   :  { %186 = vmatpush.bf16.msra.mxu2 %v1291_v1 }
   0x4   :  { %17 = vsyncpa [#allocation3], 0  ;;  %v1287_v4 = vld [vmem:[%s1881_s0 + $0x28] sm:$0xff]  ;;  %v1282_v5 = vld [vmem:[%s1881_s0] sm:$0xff]  ;;  %vm147_vm0 = vcmask 261120   ;;  %s1388_s28 = smov 96  }
   0x5   :  { %v1286_v6 = vld [vmem:[%s1881_s0 + $0x20] sm:$0xff]  ;;  %v1285_v7 = vld [vmem:[%s1881_s0 + $0x18] sm:$0xff]  ;;  %v1284_v8 = vld [vmem:[%s1881_s0 + $0x10] sm:$0xff]  ;;  %vm364_vm1 = vcmask 1043456   ;;  %vm339_vm2 = vcmask 64512   ;;  %vm548_vm3 = vcmask 31744  }
   0x6   :  { %113 = vmatpush.bf16.msra.mxu0 %v1288_v2  ;;  %240 = vmatpush.bf16.msra.mxu3 %v1290_v3  ;;  %v1283_v9 = vld [vmem:[%s1881_s0 + $0x8] sm:$0xff]  ;;  %v59_v10 = vld [vmem:[%s1891_s10] sm:$0xf]  ;;  %v203_v27 = vld [vmem:[%s1882_s1 + $0x50] sm:$0xff]  ;;  %vm710_vm4 = vcmask 1041409   ;;  %vm713_vm5 = vcmask 1042434  }
   0x7   :  { %187 = vmatpush.bf16.msra.mxu2 %v1290_v3  ;;  %v1293_v11 = vld [vmem:[%s1885_s4 + $0x8] sm:$0xff]  ;;  %v1292_v12 = vld [vmem:[%s1885_s4] sm:$0xff]  ;;  %v204_v30 = vld [vmem:[%s1882_s1 + $0x58] sm:$0xff]  ;;  %vm716_vm6 = vcmask 1043459   ;;  %vm919_vm7 = vcmask 1041408   ;;  %vm719_vm8 = vcmask 1044484  }
   0x8   :  { %157 = vmatpush.bf16.msra.mxu1 %v1293_v11  ;;  %v199_v33 = vld [vmem:[%s1882_s1 + $0x30] sm:$0xff]  ;;  %v205_v34 = vld [vmem:[%s1882_s1 + $0x60] sm:$0xff]  ;;  %v198_v38 = vld [vmem:[%s1882_s1 + $0x28] sm:$0xff]  ;;  %vm722_vm9 = vcmask 1045509   ;;  %vm725_vm10 = vcmask 1046534   ;;  %vm728_vm11 = vcmask 1047559  }
   0x9   :  { %1199 = vmatmul.msk.bf16.vlgmr.msra.gmra.mxu3 %vm147_vm0, %v1282_v5  ;;  %v206_v39 = vld [vmem:[%s1882_s1 + $0x68] sm:$0xff]  ;;  %v193_v43 = vld [vmem:[%s1882_s1] sm:$0xff]  ;;  %v196_v51 = vld [vmem:[%s1882_s1 + $0x18] sm:$0xff]  ;;  %s1389_s24 = smov [#allocation2]   ;;  %s1140_s26 = sshll.u32 %s1893_s12, 4  ;;  %s1141_s26 = int_to_ptr.hbm [resolvable:$true] %s1140_s26 }
   0xa   :  { %114 = vmatpush.bf16.msra.mxu0 %v1287_v4  ;;  %v202_v44 = vld [vmem:[%s1882_s1 + $0x48] sm:$0xff]  ;;  %v197_v47 = vld [vmem:[%s1882_s1 + $0x20] sm:$0xff]  ;;  %v1296_v3 = vld [vmem:[%s1892_s11 + $0x10] sm:$0xff] }
   0xb   :  { %v1303_v49 = vld [vmem:[%s1889_s8 + $0x8] sm:$0xff]  ;;  %v1302_v50 = vld [vmem:[%s1889_s8] sm:$0xff] }
   0xc   :  { %158 = vmatpush.bf16.msra.mxu1 %v1292_v12  ;;  %541 = vmatpush.bf16.msrb.mxu3 %v1303_v49  ;;  %v1308_v53 = vld [vmem:[%s1883_s2] ss:$0 sm:$0xff] }
   0xd   :  { %487 = vmatpush.bf16.msrb.mxu2 %v1303_v49  ;;  %v1309_v56 = vld [vmem:[%s1884_s3] ss:$0 sm:$0xff] }
   0xe   :  { %115 = vmatpush.bf16.msra.mxu0 %v1286_v6  ;;  %v1294_v59 = vld [vmem:[%s1892_s11] sm:$0xff] }
   0xf   :  { %v201_v11 = vld [vmem:[%s1882_s1 + $0x40] sm:$0xff] }
  0x10   :  { %542 = vmatpush.bf16.msrb.mxu3 %v1302_v50  ;;  %v1298_v12 = vld [vmem:[%s1892_s11 + $0x20] sm:$0xff] }
  0x11   :  { %488 = vmatpush.bf16.msrb.mxu2 %v1302_v50 }
  0x12   :  { %116 = vmatpush.bf16.msra.mxu0 %v1285_v7 }
  0x16   :  { %117 = vmatpush.bf16.msra.mxu0 %v1284_v8 }
  0x19   :  { %1200 = vmatmul.msk.bf16.gmra.mxu3 %vm147_vm0, %v1283_v9 }
  0x1a   :  { %118 = vmatpush.bf16.msra.mxu0 %v1283_v9 }
  0x1e   :  { %119 = vmatpush.bf16.msra.mxu0 %v1282_v5  ;;  %v207_v5 = vld [vmem:[%s1882_s1 + $0x70] sm:$0xff] }
  0x21   :  { %120 = vmatmul.bf16.vlgmr.msra.gmra.mxu0 %v59_v10 }
  0x29   :  { %1201 = vmatmul.msk.bf16.gmra.mxu3 %vm147_vm0, %v1284_v8  ;;  %v208_v8 = vld [vmem:[%s1882_s1 + $0x78] sm:$0xff] }
  0x39   :  { %1202 = vmatmul.msk.bf16.gmra.mxu3 %vm147_vm0, %v1285_v7 }
  0x49   :  { %1203 = vmatmul.msk.bf16.gmra.mxu3 %vm147_vm0, %v1286_v6 }
  0x59   :  { %1204 = vmatmul.msk.bf16.gmra.mxu3 %vm147_vm0, %v1287_v4  ;;  %v1297_v4 = vld [vmem:[%s1892_s11 + $0x18] sm:$0xff] }
  0x69   :  { %1205 = vmatmul.msk.bf16.gmra.mxu3 %vm147_vm0, %v1288_v2  ;;  %v1295_v2 = vld [vmem:[%s1892_s11 + $0x8] sm:$0xff] }
  0x79   :  { %1206 = vmatmul.msk.bf16.gmra.mxu3 %vm147_vm0, %v1289_v0 }
  0x8c   :  { %v242_v13 = vpop.f32.mrf.mxu3 }
  0x8d   :  { %v1560_v45 = vadd.f32 %v242_v13, %v193_v43 }
  0x94   :  { %v1502_v14 = vpop.f32.mrf.mxu3 }
  0x9c   :  { %v1504_v15 = vpop.f32.mrf.mxu3 }
  0x9e   :  { %v121_v16 = vpop.f32.mrf.mxu0 }
  0x9f   :  { %v125_v17 = vmul.f32 0.0625, %v121_v16  ;;  %v200_v16 = vld [vmem:[%s1882_s1 + $0x38] sm:$0xff] }
  0xa1   :  { %v126_v18 = vpack.c.bf16 %v125_v17, %v125_v17 }
  0xa3   :  { %1189 = vmatmul.msk.bf16.vlgmr.msra.gmra.mxu1 %vm147_vm0, %v126_v18  ;;  %1198 = vmatmul.msk.bf16.vlgmr.msra.gmra.mxu2 %vm147_vm0, %v126_v18  ;;  %v195_v18 = vld [vmem:[%s1882_s1 + $0x10] sm:$0xff] }
  0xa4   :  { %v249_v19 = vpop.f32.mrf.mxu3 }
  0xa5   :  { %v1584_v52 = vadd.f32 %v249_v19, %v196_v51  ;;  %v1299_v19 = vld [vmem:[%s1892_s11 + $0x28] sm:$0xff] }
  0xa6   :  { %v123_v20 = vpop.f32.mrf.mxu0 }
  0xa7   :  { %v248_v20 = vadd.f32 %v1504_v15, %v195_v18  ;;  %v1301_v15 = vld [vmem:[%s1892_s11 + $0x38] sm:$0xff] }
  0xac   :  { %v252_v21 = vpop.f32.mrf.mxu3 }
  0xad   :  { %v1571_v48 = vadd.f32 %v252_v21, %v197_v47  ;;  %v194_v21 = vld [vmem:[%s1882_s1 + $0x8] sm:$0xff] }
  0xb4   :  { %v254_v22 = vpop.f32.mrf.mxu3 }
  0xb5   :  { %v1546_v40 = vadd.f32 %v254_v22, %v198_v38  ;;  %v245_v22 = vadd.f32 %v1502_v14, %v194_v21 }
  0xbc   :  { %v257_v23 = vpop.f32.mrf.mxu3 }
  0xbd   :  { %v1532_v35 = vadd.f32 %v257_v23, %v199_v33  ;;  %v1300_v23 = vld [vmem:[%s1892_s11 + $0x30] sm:$0xff] }
  0xc4   :  { %v1508_v24 = vpop.f32.mrf.mxu3 }
  0xc5   :  { %v260_v17 = vadd.f32 %v1508_v24, %v200_v16 }
  0xcc   :  { %v1510_v25 = vpop.f32.mrf.mxu3 }
  0xcd   :  { %v263_v13 = vadd.f32 %v1510_v25, %v201_v11 }
  0xd4   :  { %v264_v26 = vpop.f32.mrf.mxu3 }
  0xd5   :  { %v1562_v46 = vadd.f32 %v264_v26, %v202_v44 }
  0xdc   :  { %v267_v28 = vpop.f32.mrf.mxu3 }
  0xdd   :  { %v1515_v29 = vadd.f32 %v267_v28, %v203_v27 }
  0xdf   :  { %1008 = vrot.lane.b32.xlu2 %v1515_v29, %s1388_s28 }
  0xe4   :  { %v269_v31 = vpop.f32.mrf.mxu3 }
  0xe5   :  { %v1522_v32 = vadd.f32 %v269_v31, %v204_v30 }
  0xe7   :  { %1010 = vrot.lane.b32.xlu2 %v1522_v32, %s1388_s28 }
  0xec   :  { %v272_v36 = vpop.f32.mrf.mxu3 }
  0xed   :  { %v1534_v37 = vadd.f32 %v272_v36, %v205_v34 }
  0xef   :  { %1012 = vrot.lane.b32.xlu1 %v1534_v37, %s1388_s28  ;;  %1000 = vrot.lane.b32.xlu2 %v1532_v35, %s1388_s28 }
  0xf4   :  { %v274_v41 = vpop.f32.mrf.mxu3 }
  0xf5   :  { %v1548_v42 = vadd.f32 %v274_v41, %v206_v39 }
  0xf7   :  { %1014 = vrot.lane.b32.xlu1 %v1548_v42, %s1388_s28  ;;  %998 = vrot.lane.b32.xlu2 %v1546_v40, %s1388_s28 }
  0xfc   :  { %v277_v6 = vpop.f32.mrf.mxu3 }
  0xfd   :  { %v1615_v7 = vadd.f32 %v277_v6, %v207_v5 }
  0xff   :  { %1006 = vrot.lane.b32.xlu1 %v1562_v46, %s1388_s28  ;;  %988 = vrot.lane.b32.xlu2 %v1560_v45, %s1388_s28 }
 0x100   :  { %1016 = vrot.lane.b32.xlu0 %v1615_v7, %s1388_s28 }
 0x104   :  { %v279_v9 = vpop.f32.mrf.mxu3 }
 0x105   :  { %v1622_v10 = vadd.f32 %v279_v9, %v208_v8 }
 0x107   :  { %996 = vrot.lane.b32.xlu1 %v1571_v48, %s1388_s28 }
 0x108   :  { %1018 = vrot.lane.b32.xlu0 %v1622_v10, %s1388_s28 }
 0x10f   :  { %994 = vrot.lane.b32.xlu1 %v1584_v52, %s1388_s28 }
 0x110   :  { %1004 = vrot.lane.b32.xlu0 %v263_v13, %s1388_s28 }
 0x118   :  { %1002 = vrot.lane.b32.xlu0 %v260_v17, %s1388_s28 }
 0x120   :  { %v160_v54 = vpop.f32.mrf.mxu1  ;;  %992 = vrot.lane.b32.xlu0 %v248_v20, %s1388_s28 }
 0x121   :  { %v161_v55 = vadd.f32 %v1308_v53, %v160_v54 }
 0x123   :  { %v298_v57 = vpack.c.bf16 %v161_v55, %v161_v55 }
 0x125   :  { %v366_v58 = vsel %vm364_vm1, %v298_v57, 0 }
 0x126   :  { %v189_v60 = vpop.f32.mrf.mxu2  ;;  %375 = vmatpush.bf16.msrb.mxu1 %v366_v58 }
 0x127   :  { %v190_v61 = vadd.f32 %v1309_v56, %v189_v60 }
 0x128   :  { %v162_v62 = vpop.f32.mrf.mxu1  ;;  %990 = vrot.lane.b32.xlu0 %v245_v22, %s1388_s28 }
 0x129   :  { %v530_v63 = vmul.f32 %v190_v61, %v161_v55  ;;  %1078 = vrot.lane.b32.xlu1 %v190_v61, %s1388_s28  ;;  %1239 = vmatmul.msk.bf16.vlgmr.msrb.gmra.mxu1 %vm339_vm2, %v1294_v59 }
 0x12b   :  { %v531_v0 = vpack.c.bf16 %v530_v63, %v530_v63 }
 0x12d   :  { %1263 = vmatmul.msk.bf16.vlgmr.msrb.gmra.mxu3 %vm147_vm0, %v531_v0 }
 0x12e   :  { %v191_v1 = vpop.f32.mrf.mxu2 }
 0x139   :  { %1240 = vmatmul.msk.bf16.gmra.mxu1 %vm339_vm2, %v1295_v2 }
 0x149   :  { %1241 = vmatmul.msk.bf16.gmra.mxu1 %vm339_vm2, %v1296_v3 }
 0x159   :  { %1242 = vmatmul.msk.bf16.gmra.mxu1 %vm339_vm2, %v1297_v4 }
 0x169   :  { %1243 = vmatmul.msk.bf16.gmra.mxu1 %vm339_vm2, %v1298_v12 }
 0x179   :  { %1244 = vmatmul.msk.bf16.gmra.mxu1 %vm339_vm2, %v1299_v19 }
 0x189   :  { %1245 = vmatmul.msk.bf16.gmra.mxu1 %vm339_vm2, %v1300_v23 }
 0x199   :  { %1246 = vmatmul.msk.bf16.gmra.mxu1 %vm339_vm2, %v1301_v15 }
 0x1a6   :  { %v377_v24 = vpop.f32.mrf.mxu1 }
 0x1a7   :  { %v421_v26 = vmul.f32 %v377_v24, %v1560_v45 }
 0x1ae   :  { %v379_v25 = vpop.f32.mrf.mxu1 }
 0x1af   :  { %v422_v27 = vmul.f32 %v379_v25, %v245_v22 }
 0x1b0   :  { %v1663_v14 = vpop.f32.mrf.mxu3 }
 0x1b1   :  { %v437_v28 = vpack.c.bf16 %v422_v27, %v421_v26 }
 0x1b3   :  { %1255 = vmatmul.msk.bf16.vlgmr.msrb.gmra.mxu2 %vm147_vm0, %v437_v28 }
 0x1b6   :  { %v382_v30 = vpop.f32.mrf.mxu1 }
 0x1b7   :  { %v423_v34 = vmul.f32 %v382_v30, %v248_v20 }
 0x1b8   :  { %v546_v31 = vpop.f32.mrf.mxu3 }
 0x1be   :  { %v384_v33 = vpop.f32.mrf.mxu1 }
 0x1bf   :  { %v424_v36 = vmul.f32 %v384_v33, %v1584_v52 }
 0x1c1   :  { %v438_v38 = vpack.c.bf16 %v424_v36, %v423_v34  ;;  %v622_v34 = vrot.slane %v1663_v14, 1 }
 0x1c3   :  { %1256 = vmatmul.msk.bf16.gmra.mxu2 %vm147_vm0, %v438_v38 }
 0x1c6   :  { %v387_v39 = vpop.f32.mrf.mxu1 }
 0x1c7   :  { %v425_v43 = vmul.f32 %v387_v39, %v1571_v48 }
 0x1ce   :  { %v389_v41 = vpop.f32.mrf.mxu1 }
 0x1cf   :  { %v426_v44 = vmul.f32 %v389_v41, %v1546_v40 }
 0x1d1   :  { %v439_v45 = vpack.c.bf16 %v426_v44, %v425_v43 }
 0x1d3   :  { %1257 = vmatmul.msk.bf16.gmra.mxu2 %vm147_vm0, %v439_v45 }
 0x1d6   :  { %v392_v47 = vpop.f32.mrf.mxu1 }
 0x1d7   :  { %v427_v50 = vmul.f32 %v392_v47, %v1532_v35 }
 0x1de   :  { %v394_v49 = vpop.f32.mrf.mxu1 }
 0x1df   :  { %v428_v51 = vmul.f32 %v394_v49, %v260_v17 }
 0x1e1   :  { %v440_v53 = vpack.c.bf16 %v428_v51, %v427_v50 }
 0x1e3   :  { %1258 = vmatmul.msk.bf16.gmra.mxu2 %vm147_vm0, %v440_v53 }
 0x1e6   :  { %v397_v52 = vpop.f32.mrf.mxu1 }
 0x1e7   :  { %v429_v55 = vmul.f32 %v397_v52, %v263_v13 }
 0x1ee   :  { %v399_v54 = vpop.f32.mrf.mxu1 }
 0x1ef   :  { %v430_v56 = vmul.f32 %v399_v54, %v1562_v46 }
 0x1f1   :  { %v441_v57 = vpack.c.bf16 %v430_v56, %v429_v55 }
 0x1f3   :  { %1259 = vmatmul.msk.bf16.gmra.mxu2 %vm147_vm0, %v441_v57 }
 0x1f6   :  { %v402_v40 = vpop.f32.mrf.mxu1 }
 0x1f7   :  { %v431_v58 = vmul.f32 %v402_v40, %v1515_v29 }
 0x1fe   :  { %v404_v48 = vpop.f32.mrf.mxu1 }
 0x1ff   :  { %v432_v59 = vmul.f32 %v404_v48, %v1522_v32 }
 0x201   :  { %v442_v60 = vpack.c.bf16 %v432_v59, %v431_v58 }
 0x203   :  { %1260 = vmatmul.msk.bf16.gmra.mxu2 %vm147_vm0, %v442_v60 }
 0x206   :  { %v407_v35 = vpop.f32.mrf.mxu1 }
 0x207   :  { %v433_v62 = vmul.f32 %v407_v35, %v1534_v37 }
 0x20e   :  { %v409_v61 = vpop.f32.mrf.mxu1 }
 0x20f   :  { %v434_v63 = vmul.f32 %v409_v61, %v1548_v42 }
 0x211   :  { %v443_v0 = vpack.c.bf16 %v434_v63, %v433_v62  ;;  %v623_v62 = vrot.slane %v1663_v14, 2 }
 0x213   :  { %1261 = vmatmul.msk.bf16.gmra.mxu2 %vm147_vm0, %v443_v0 }
 0x216   :  { %v412_v46 = vpop.f32.mrf.mxu1 }
 0x217   :  { %v435_v2 = vmul.f32 %v412_v46, %v1615_v7 }
 0x21e   :  { %v414_v1 = vpop.f32.mrf.mxu1 }
 0x21f   :  { %v436_v29 = vmul.f32 %v414_v1, %v1622_v10 }
 0x221   :  { %v444_v3 = vpack.c.bf16 %v436_v29, %v435_v2 }
 0x223   :  { %1262 = vmatmul.msk.bf16.gmra.mxu2 %vm147_vm0, %v444_v3 }
 0x236   :  { %v490_v32 = vpop.f32.mrf.mxu2 }
 0x237   :  { %v549_v5 = vsel %vm548_vm3, %v490_v32, -inf }
 0x23e   :  { %v492_v4 = vpop.f32.mrf.mxu2 }
 0x23f   :  { %v550_v37 = vsel %vm548_vm3, %v492_v4, -inf }
 0x240   :  { %v551_v42 = vmax.f32 %v549_v5, %v550_v37 }
 0x242   :  { %v552_v6 = vrot.slane %v551_v42, 4 }
 0x244   :  { %v553_v8 = vmax.f32 %v551_v42, %v552_v6 }
 0x246   :  { %v554_v9 = vrot.slane %v553_v8, 2  ;;  %v495_v11 = vpop.f32.mrf.mxu2 }
 0x247   :  { %v558_v17 = vsel %vm548_vm3, %v495_v11, -inf }
 0x248   :  { %v555_v12 = vmax.f32 %v553_v8, %v554_v9 }
 0x24a   :  { %v556_v13 = vrot.slane %v555_v12, 1 }
 0x24c   :  { %v557_v7 = vmax.f32 %v555_v12, %v556_v13 }
 0x24e   :  { %v637_v10 = vmax.f32 %v557_v7, %v1663_v14  ;;  %v497_v16 = vpop.f32.mrf.mxu2 }
 0x24f   :  { %v559_v18 = vsel %vm548_vm3, %v497_v16, -inf }
 0x250   :  { %v645_v19 = vperm.slane %v637_v10, 0  ;;  %v560_v20 = vmax.f32 %v558_v17, %v559_v18 }
 0x252   :  { %v653_v21 = vsub.f32 %v490_v32, %v645_v19  ;;  %v654_v22 = vsub.f32 %v492_v4, %v645_v19  ;;  %v561_v23 = vrot.slane %v560_v20, 4 }
 0x254   :  { %v669_v15 = vmul.f32 1.442695, %v653_v21  ;;  %v671_v24 = vmul.f32 1.442695, %v654_v22  ;;  %v562_v25 = vmax.f32 %v560_v20, %v561_v23  ;;  %v624_v20 = vrot.slane %v1663_v14, 3 }
 0x256   :  { %1311 = vpow2.f32 %v669_v15  ;;  %v563_v26 = vrot.slane %v562_v25, 2  ;;  %v500_v27 = vpop.f32.mrf.mxu2 }
 0x257   :  { %1313 = vpow2.f32 %v671_v24  ;;  %v567_v45 = vsel %vm548_vm3, %v500_v27, -inf }
 0x258   :  { %v564_v28 = vmax.f32 %v562_v25, %v563_v26 }
 0x25a   :  { %v565_v30 = vrot.slane %v564_v28, 1 }
 0x25c   :  { %v1689_v31 = vpop.eup %1311  ;;  %v566_v33 = vmax.f32 %v564_v28, %v565_v30 }
 0x25d   :  { %v1692_v36 = vpop.eup %1313  ;;  %v734_v38 = vsel %vm548_vm3, %v1689_v31, 0.0 }
 0x25e   :  { %v735_v39 = vsel %vm548_vm3, %v1692_v36, 0.0  ;;  %v638_v41 = vmax.f32 %v566_v33, %v622_v34  ;;  %v502_v43 = vpop.f32.mrf.mxu2 }
 0x25f   :  { %v1698_v44 = vadd.f32 %v735_v39, %v734_v38  ;;  %v568_v47 = vsel %vm548_vm3, %v502_v43, -inf }
 0x260   :  { %v646_v49 = vperm.slane %v638_v41, 0  ;;  %v709_v50 = vrot.slane %v638_v41, 7  ;;  %v569_v51 = vmax.f32 %v567_v45, %v568_v47 }
 0x262   :  { %v655_v53 = vsub.f32 %v495_v11, %v646_v49  ;;  %v656_v52 = vsub.f32 %v497_v16, %v646_v49  ;;  %v711_v54 = vsel %vm710_vm4, %v709_v50, %v637_v10  ;;  %v570_v55 = vrot.slane %v569_v51, 4 }
 0x264   :  { %v673_v56 = vmul.f32 1.442695, %v655_v53  ;;  %v675_v57 = vmul.f32 1.442695, %v656_v52  ;;  %v571_v40 = vmax.f32 %v569_v51, %v570_v55 }
 0x266   :  { %1315 = vpow2.f32 %v673_v56  ;;  %v572_v48 = vrot.slane %v571_v40, 2  ;;  %v505_v58 = vpop.f32.mrf.mxu2 }
 0x267   :  { %1317 = vpow2.f32 %v675_v57  ;;  %v576_v3 = vsel %vm548_vm3, %v505_v58, -inf }
 0x268   :  { %v573_v59 = vmax.f32 %v571_v40, %v572_v48 }
 0x26a   :  { %v574_v60 = vrot.slane %v573_v59, 1 }
 0x26c   :  { %v1703_v35 = vpop.eup %1315  ;;  %v575_v61 = vmax.f32 %v573_v59, %v574_v60 }
 0x26d   :  { %v1706_v63 = vpop.eup %1317  ;;  %v743_v0 = vsel %vm548_vm3, %v1703_v35, 0.0 }
 0x26e   :  { %v744_v46 = vsel %vm548_vm3, %v1706_v63, 0.0  ;;  %v639_v1 = vmax.f32 %v575_v61, %v623_v62  ;;  %v507_v2 = vpop.f32.mrf.mxu2 }
 0x26f   :  { %v1712_v29 = vadd.f32 %v744_v46, %v743_v0  ;;  %v577_v32 = vsel %vm548_vm3, %v507_v2, -inf  ;;  %v625_v0 = vrot.slane %v1663_v14, 4 }
 0x270   :  { %v647_v4 = vperm.slane %v639_v1, 0  ;;  %v712_v5 = vrot.slane %v639_v1, 6  ;;  %v578_v37 = vmax.f32 %v576_v3, %v577_v32 }
 0x272   :  { %v657_v42 = vsub.f32 %v500_v27, %v647_v4  ;;  %v658_v6 = vsub.f32 %v502_v43, %v647_v4  ;;  %v714_v8 = vsel %vm713_vm5, %v712_v5, %v711_v54  ;;  %v579_v9 = vrot.slane %v578_v37, 4 }
 0x274   :  { %v677_v11 = vmul.f32 1.442695, %v657_v42  ;;  %v679_v12 = vmul.f32 1.442695, %v658_v6  ;;  %v580_v13 = vmax.f32 %v578_v37, %v579_v9  ;;  %v626_v37 = vrot.slane %v1663_v14, 5 }
 0x276   :  { %1319 = vpow2.f32 %v677_v11  ;;  %v581_v7 = vrot.slane %v580_v13, 2  ;;  %v510_v10 = vpop.f32.mrf.mxu2 }
 0x277   :  { %1321 = vpow2.f32 %v679_v12  ;;  %v585_v26 = vsel %vm548_vm3, %v510_v10, -inf }
 0x278   :  { %v582_v16 = vmax.f32 %v580_v13, %v581_v7 }
 0x27a   :  { %v583_v17 = vrot.slane %v582_v16, 1 }
 0x27c   :  { %v1717_v18 = vpop.eup %1319  ;;  %v584_v19 = vmax.f32 %v582_v16, %v583_v17 }
 0x27d   :  { %v1720_v21 = vpop.eup %1321  ;;  %v752_v22 = vsel %vm548_vm3, %v1717_v18, 0.0 }
 0x27e   :  { %v753_v23 = vsel %vm548_vm3, %v1720_v21, 0.0  ;;  %v640_v15 = vmax.f32 %v584_v19, %v624_v20  ;;  %v512_v24 = vpop.f32.mrf.mxu2 }
 0x27f   :  { %v1726_v25 = vadd.f32 %v753_v23, %v752_v22  ;;  %v586_v27 = vsel %vm548_vm3, %v512_v24, -inf }
 0x280   :  { %v648_v28 = vperm.slane %v640_v15, 0  ;;  %v715_v30 = vrot.slane %v640_v15, 5  ;;  %v587_v33 = vmax.f32 %v585_v26, %v586_v27 }
 0x282   :  { %v659_v34 = vsub.f32 %v505_v58, %v648_v28  ;;  %v660_v38 = vsub.f32 %v507_v2, %v648_v28  ;;  %v1731_v39 = vsel %vm716_vm6, %v715_v30, %v714_v8  ;;  %v588_v41 = vrot.slane %v587_v33, 4 }
 0x284   :  { %v681_v43 = vmul.f32 1.442695, %v659_v34  ;;  %v683_v45 = vmul.f32 1.442695, %v660_v38  ;;  %v589_v47 = vmax.f32 %v587_v33, %v588_v41 }
 0x286   :  { %1323 = vpow2.f32 %v681_v43  ;;  %v515_v49 = vpop.f32.mrf.mxu2  ;;  %v590_v50 = vrot.slane %v589_v47, 2 }
 0x287   :  { %1325 = vpow2.f32 %v683_v45  ;;  %v594_v40 = vsel %vm548_vm3, %v515_v49, -inf }
 0x288   :  { %v591_v53 = vmax.f32 %v589_v47, %v590_v50 }
 0x28a   :  { %v592_v58 = vrot.slane %v591_v53, 1 }
 0x28c   :  { %v1733_v51 = vpop.eup %1323  ;;  %v593_v61 = vmax.f32 %v591_v53, %v592_v58 }
 0x28d   :  { %v1735_v52 = vpop.eup %1325  ;;  %v761_v54 = vsel %vm548_vm3, %v1733_v51, 0.0 }
 0x28e   :  { %v762_v55 = vsel %vm548_vm3, %v1735_v52, 0.0  ;;  %v517_v56 = vpop.f32.mrf.mxu2  ;;  %v1746_v2 = vmax.f32 %v593_v61, %v625_v0 }
 0x28f   :  { %v1741_v57 = vadd.f32 %v762_v55, %v761_v54  ;;  %v595_v48 = vsel %vm548_vm3, %v517_v56, -inf }
 0x290   :  { %v596_v59 = vmax.f32 %v594_v40, %v595_v48  ;;  %v649_v4 = vperm.slane %v1746_v2, 0  ;;  %v737_v48 = vrot.slane %v1698_v44, 4 }
 0x292   :  { %v597_v60 = vrot.slane %v596_v59, 4  ;;  %v661_v11 = vsub.f32 %v510_v10, %v649_v4  ;;  %v662_v7 = vsub.f32 %v512_v24, %v649_v4  ;;  %v627_v24 = vrot.slane %v1663_v14, 6 }
 0x293   :  { %v746_v4 = vrot.slane %v1712_v29, 4 }
 0x294   :  { %v598_v62 = vmax.f32 %v596_v59, %v597_v60  ;;  %v685_v20 = vmul.f32 1.442695, %v661_v11  ;;  %v687_v23 = vmul.f32 1.442695, %v662_v7 }
 0x296   :  { %v599_v46 = vrot.slane %v598_v62, 2  ;;  %v520_v1 = vpop.f32.mrf.mxu2  ;;  %1327 = vpow2.f32 %v685_v20 }
 0x297   :  { %v603_v8 = vsel %vm548_vm3, %v520_v1, -inf  ;;  %1329 = vpow2.f32 %v687_v23 }
 0x298   :  { %v600_v3 = vmax.f32 %v598_v62, %v599_v46 }
 0x29a   :  { %v601_v32 = vrot.slane %v600_v3, 1 }
 0x29c   :  { %v602_v5 = vmax.f32 %v600_v3, %v601_v32  ;;  %v1758_v34 = vpop.eup %1327  ;;  %v738_v32 = vadd.f32 %v737_v48, %v1698_v44 }
 0x29d   :  { %v1764_v43 = vpop.eup %1329  ;;  %v770_v58 = vsel %vm548_vm3, %v1758_v34, 0.0 }
 0x29e   :  { %v1750_v42 = vmax.f32 %v602_v5, %v626_v37  ;;  %v522_v6 = vpop.f32.mrf.mxu2  ;;  %v771_v59 = vsel %vm548_vm3, %v1764_v43, 0.0  ;;  %v755_v37 = vrot.slane %v1726_v25, 4  ;;  %v739_v44 = vrot.slane %v738_v32, 2 }
 0x29f   :  { %v604_v9 = vsel %vm548_vm3, %v522_v6, -inf }
 0x2a0   :  { %v650_v12 = vperm.slane %v1750_v42, 0  ;;  %v605_v13 = vmax.f32 %v603_v8, %v604_v9  ;;  %v764_v8 = vrot.slane %v1741_v57, 4  ;;  %v886_v9 = vld [vmem:[%s1890_s9] sm:$0x3]  ;;  %v721_v23 = vrot.slane %v1750_v42, 3 }
 0x2a1   :  { %v921_v7 = vsel %vm919_vm7, %v886_v9, 0 }
 0x2a2   :  { %v663_v16 = vsub.f32 %v515_v49, %v650_v12  ;;  %v606_v17 = vrot.slane %v605_v13, 4  ;;  %v664_v19 = vsub.f32 %v517_v56, %v650_v12  ;;  %930 = vmatpush.bf16.msrb.mxu0 %v921_v7  ;;  %1071 = vmatpush.bf16.msra.mxu3 %v921_v7 }
 0x2a4   :  { %v607_v22 = vmax.f32 %v605_v13, %v606_v17  ;;  %v689_v15 = vmul.f32 1.442695, %v663_v16  ;;  %v691_v28 = vmul.f32 1.442695, %v664_v19  ;;  %v628_v13 = vrot.slane %v1663_v14, 7 }
 0x2a5   :  { %v747_v16 = vadd.f32 %v746_v4, %v1712_v29  ;;  %v718_v17 = vrot.slane %v1746_v2, 4 }
 0x2a6   :  { %v608_v26 = vrot.slane %v607_v22, 2  ;;  %v1755_v27 = vpop.f32.mrf.mxu2  ;;  %1331 = vpow2.f32 %v689_v15 }
 0x2a7   :  { %1333 = vpow2.f32 %v691_v28  ;;  %v612_v45 = vsel %vm548_vm3, %v1755_v27, -inf  ;;  %v765_v28 = vadd.f32 %v764_v8, %v1741_v57  ;;  %v720_v42 = vsel %vm719_vm8, %v718_v17, %v1731_v39 }
 0x2a8   :  { %v609_v30 = vmax.f32 %v607_v22, %v608_v26  ;;  %v756_v22 = vadd.f32 %v755_v37, %v1726_v25  ;;  %v723_v57 = vsel %vm722_vm9, %v721_v23, %v720_v42 }
 0x2aa   :  { %v610_v10 = vrot.slane %v609_v30, 1 }
 0x2ac   :  { %v611_v33 = vmax.f32 %v609_v30, %v610_v10  ;;  %v1770_v49 = vpop.eup %1331 }
 0x2ad   :  { %v1773_v54 = vpop.eup %1333  ;;  %v779_v60 = vsel %vm548_vm3, %v1770_v49, 0.0 }
 0x2ae   :  { %v1760_v38 = vmax.f32 %v611_v33, %v627_v24  ;;  %v1762_v41 = vpop.f32.mrf.mxu2  ;;  %v780_v61 = vsel %vm548_vm3, %v1773_v54, 0.0 }
 0x2af   :  { %v613_v47 = vsel %vm548_vm3, %v1762_v41, -inf  ;;  %v781_v5 = vadd.f32 %v780_v61, %v779_v60 }
 0x2b0   :  { %v651_v50 = vperm.slane %v1760_v38, 0  ;;  %v614_v53 = vmax.f32 %v612_v45, %v613_v47  ;;  %v724_v29 = vrot.slane %v1760_v38, 2  ;;  %v748_v45 = vrot.slane %v747_v16, 2 }
 0x2b1   :  { %v782_v19 = vrot.slane %v781_v5, 4 }
 0x2b2   :  { %v665_v55 = vsub.f32 %v520_v1, %v651_v50  ;;  %v666_v56 = vsub.f32 %v522_v6, %v651_v50  ;;  %v615_v40 = vrot.slane %v614_v53, 4  ;;  %v772_v1 = vadd.f32 %v771_v59, %v770_v58 }
 0x2b3   :  { %v783_v33 = vadd.f32 %v782_v19, %v781_v5  ;;  %v757_v50 = vrot.slane %v756_v22, 2 }
 0x2b4   :  { %v693_v62 = vmul.f32 1.442695, %v665_v55  ;;  %v695_v0 = vmul.f32 1.442695, %v666_v56  ;;  %v616_v46 = vmax.f32 %v614_v53, %v615_v40  ;;  %v773_v11 = vrot.slane %v772_v1, 4 }
 0x2b5   :  { %v766_v53 = vrot.slane %v765_v28, 2  ;;  %v726_v55 = vsel %vm725_vm10, %v724_v29, %v723_v57  ;;  %v784_v59 = vrot.slane %v783_v33, 2 }
 0x2b6   :  { %1335 = vpow2.f32 %v693_v62  ;;  %v617_v3 = vrot.slane %v616_v46, 2  ;;  %v774_v30 = vadd.f32 %v773_v11, %v772_v1  ;;  %v749_v1 = vadd.f32 %v748_v45, %v747_v16 }
 0x2b7   :  { %1337 = vpow2.f32 %v695_v0  ;;  %v767_v5 = vadd.f32 %v766_v53, %v765_v28  ;;  %v785_v8 = vadd.f32 %v784_v59, %v783_v33 }
 0x2b8   :  { %v618_v6 = vmax.f32 %v616_v46, %v617_v3  ;;  %v775_v40 = vrot.slane %v774_v30, 2  ;;  %v740_v46 = vadd.f32 %v739_v44, %v738_v32  ;;  %v758_v3 = vadd.f32 %v757_v50, %v756_v22 }
 0x2b9   :  { %v768_v11 = vrot.slane %v767_v5, 1 }
 0x2ba   :  { %v619_v12 = vrot.slane %v618_v6, 1  ;;  %v776_v37 = vadd.f32 %v775_v40, %v774_v30  ;;  %v759_v9 = vrot.slane %v758_v3, 1 }
 0x2bb   :  { %v769_v23 = vadd.f32 %v768_v11, %v767_v5 }
 0x2bc   :  { %v1794_v20 = vpop.eup %1335  ;;  %v620_v15 = vmax.f32 %v618_v6, %v619_v12  ;;  %v777_v12 = vrot.slane %v776_v37, 1  ;;  %v760_v17 = vadd.f32 %v759_v9, %v758_v3 }
 0x2bd   :  { %v1798_v26 = vpop.eup %1337  ;;  %v788_v2 = vsel %vm548_vm3, %v1794_v20, 0.0 }
 0x2be   :  { %v789_v10 = vsel %vm548_vm3, %v1798_v26, 0.0  ;;  %v644_v25 = vmax.f32 %v620_v15, %v628_v13  ;;  %v778_v15 = vadd.f32 %v777_v12, %v776_v37 }
 0x2bf   :  { %v790_v24 = vadd.f32 %v789_v10, %v788_v2 }
 0x2c0   :  { %v652_v47 = vperm.slane %v644_v25, 0  ;;  %v727_v38 = vrot.slane %v644_v25, 1 }
 0x2c1   :  { %v791_v56 = vrot.slane %v790_v24, 4 }
 0x2c2   :  { %v667_v48 = vsub.f32 %v1755_v27, %v652_v47  ;;  %v668_v58 = vsub.f32 %v1762_v41, %v652_v47  ;;  %v729_v39 = vsel %vm728_vm11, %v727_v38, %v726_v55  ;;  %v741_v27 = vrot.slane %v740_v46, 1 }
 0x2c3   :  { %v792_v60 = vadd.f32 %v791_v56, %v790_v24  ;;  %v731_v61 = vsub.f32 %v1663_v14, %v729_v39  ;;  %v750_v41 = vrot.slane %v749_v1, 1  ;;  %v786_v14 = vrot.slane %v785_v8, 1 }
 0x2c4   :  { %v697_v62 = vmul.f32 1.442695, %v667_v48  ;;  %v699_v0 = vmul.f32 1.442695, %v668_v58  ;;  %v742_v44 = vadd.f32 %v741_v27, %v740_v46 }
 0x2c5   :  { %v732_v4 = vmul.f32 1.442695, %v731_v61  ;;  %v793_v6 = vrot.slane %v792_v60, 2  ;;  %v751_v16 = vadd.f32 %v750_v41, %v749_v1  ;;  %v787_v2 = vadd.f32 %v786_v14, %v785_v8 }
 0x2c6   :  { %1339 = vpow2.f32 %v697_v62 }
 0x2c7   :  { %1341 = vpow2.f32 %v699_v0  ;;  %v794_v13 = vadd.f32 %v793_v6, %v792_v60 }
 0x2c8   :  { %1343 = vpow2.f32 %v732_v4 }
 0x2c9   :  { %v795_v28 = vrot.slane %v794_v13, 1 }
 0x2cb   :  { %v796_v50 = vadd.f32 %v795_v28, %v794_v13 }
 0x2cc   :  { %v1814_v7 = vpop.eup %1339 }
 0x2cd   :  { %v1816_v32 = vpop.eup %1341  ;;  %v797_v19 = vsel %vm548_vm3, %v1814_v7, 0.0 }
 0x2ce   :  { %v1820_v22 = vpop.eup %1343  ;;  %v798_v29 = vsel %vm548_vm3, %v1816_v32, 0.0 }
 0x2cf   :  { %v799_v30 = vadd.f32 %v798_v29, %v797_v19  ;;  %v822_v10 = vadd.f32 %v1820_v22, %v742_v44  ;;  %v807_v25 = vrot.slane %v1820_v22, 1  ;;  %v808_v42 = vrot.slane %v1820_v22, 2 }
 0x2d0   :  { %v809_v33 = vrot.slane %v1820_v22, 3  ;;  %v810_v24 = vrot.slane %v1820_v22, 4  ;;  %v811_v45 = vrot.slane %v1820_v22, 5  ;;  %v812_v47 = vrot.slane %v1820_v22, 6 }
 0x2d1   :  { %v800_v57 = vrot.slane %v799_v30, 4  ;;  %1345 = vrcp.f32 %v822_v10  ;;  %v823_v38 = vadd.f32 %v807_v25, %v751_v16  ;;  %v824_v53 = vadd.f32 %v808_v42, %v760_v17 }
 0x2d2   :  { %v825_v55 = vadd.f32 %v809_v33, %v769_v23  ;;  %v826_v56 = vadd.f32 %v810_v24, %v778_v15  ;;  %v827_v48 = vadd.f32 %v811_v45, %v787_v2  ;;  %v828_v58 = vadd.f32 %v812_v47, %v796_v50 }
 0x2d3   :  { %v801_v40 = vadd.f32 %v800_v57, %v799_v30  ;;  %1347 = vrcp.f32 %v823_v38  ;;  %v813_v8 = vrot.slane %v1820_v22, 7 }
 0x2d4   :  { %1349 = vrcp.f32 %v824_v53 }
 0x2d5   :  { %v802_v39 = vrot.slane %v801_v40, 2  ;;  %1351 = vrcp.f32 %v825_v55 }
 0x2d6   :  { %1353 = vrcp.f32 %v826_v56 }
 0x2d7   :  { %v1346_v59 = vpop.eup %1345  ;;  %v803_v60 = vadd.f32 %v802_v39, %v801_v40  ;;  %1355 = vrcp.f32 %v827_v48 }
 0x2d8   :  { %v838_v61 = vperm.slane %v1346_v59, 0  ;;  %1357 = vrcp.f32 %v828_v58 }
 0x2d9   :  { %v1348_v62 = vpop.eup %1347  ;;  %v804_v0 = vrot.slane %v803_v60, 1 }
 0x2da   :  { %v1350_v46 = vpop.eup %1349  ;;  %v846_v1 = vmul.f32 %v1689_v31, %v838_v61  ;;  %v847_v3 = vmul.f32 %v1692_v36, %v838_v61  ;;  %v870_v4 = vrot.slane %v1348_v62, 7  ;;  %v839_v5 = vperm.slane %v1348_v62, 0 }
 0x2db   :  { %v1352_v37 = vpop.eup %1351  ;;  %v805_v6 = vadd.f32 %v804_v0, %v803_v60  ;;  %v872_v27 = vrot.slane %v1350_v46, 6  ;;  %v840_v41 = vperm.slane %v1350_v46, 0  ;;  %v1013_v0 = vpop.permute.xlu1 %1012 }
 0x2dc   :  { %v1354_v9 = vpop.eup %1353  ;;  %v887_v11 = vpack.c.bf16 %v847_v3, %v846_v1  ;;  %v871_v12 = vsel %vm710_vm4, %v870_v4, %v1346_v59  ;;  %v874_v13 = vrot.slane %v1352_v37, 5  ;;  %v848_v14 = vmul.f32 %v1703_v35, %v839_v5 }
 0x2dd   :  { %v1356_v44 = vpop.eup %1355  ;;  %v829_v16 = vadd.f32 %v813_v8, %v805_v6  ;;  %v873_v31 = vsel %vm713_vm5, %v872_v27, %v871_v12  ;;  %v876_v36 = vrot.slane %v1354_v9, 4  ;;  %v849_v17 = vmul.f32 %v1706_v63, %v839_v5 }
 0x2de   :  { %v1358_v19 = vpop.eup %1357  ;;  %1264 = vmatmul.msk.bf16.vlgmr.msrb.gmra.mxu0 %vm548_vm3, %v887_v11  ;;  %v875_v23 = vsel %vm716_vm6, %v874_v13, %v873_v31  ;;  %v878_v15 = vrot.slane %v1356_v44, 3  ;;  %v850_v28 = vmul.f32 %v1717_v18, %v840_v41  ;;  %v851_v29 = vmul.f32 %v1720_v21, %v840_v41 }
 0x2df   :  { %1359 = vrcp.f32 %v829_v16  ;;  %v877_v35 = vsel %vm719_vm8, %v876_v36, %v875_v23  ;;  %v880_v2 = vrot.slane %v1358_v19, 2  ;;  %v888_v30 = vpack.c.bf16 %v849_v17, %v848_v14 }
 0x2e0   :  { %v879_v10 = vsel %vm722_vm9, %v878_v15, %v877_v35  ;;  %v889_v25 = vpack.c.bf16 %v851_v29, %v850_v28  ;;  %v841_v42 = vperm.slane %v1352_v37, 0  ;;  %v843_v33 = vperm.slane %v1356_v44, 0 }
 0x2e1   :  { %v881_v63 = vsel %vm725_vm10, %v880_v2, %v879_v10  ;;  %v844_v24 = vperm.slane %v1358_v19, 0 }
 0x2e2   :  { %v852_v45 = vmul.f32 %v1733_v51, %v841_v42  ;;  %v853_v57 = vmul.f32 %v1735_v52, %v841_v42  ;;  %v856_v18 = vmul.f32 %v1770_v49, %v843_v33  ;;  %v857_v21 = vmul.f32 %v1773_v54, %v843_v33 }
 0x2e3   :  { %v858_v47 = vmul.f32 %v1794_v20, %v844_v24  ;;  %v859_v38 = vmul.f32 %v1798_v26, %v844_v24  ;;  %v842_v20 = vperm.slane %v1354_v9, 0 }
 0x2e4   :  { %v890_v50 = vpack.c.bf16 %v853_v57, %v852_v45  ;;  %v892_v55 = vpack.c.bf16 %v857_v21, %v856_v18 }
 0x2e5   :  { %v1360_v53 = vpop.eup %1359  ;;  %v893_v56 = vpack.c.bf16 %v859_v38, %v858_v47  ;;  %v854_v26 = vmul.f32 %v1758_v34, %v842_v20  ;;  %v855_v59 = vmul.f32 %v1764_v43, %v842_v20  ;;  %v1015_v34 = vpop.permute.xlu1 %1014  ;;  %v1304_v20 = vld [vmem:[%s1887_s6] sm:$0xff] }
 0x2e6   :  { %v882_v40 = vrot.slane %v1360_v53, 1  ;;  %v845_v48 = vperm.slane %v1360_v53, 0 }
 0x2e8   :  { %v883_v58 = vsel %vm728_vm11, %v882_v40, %v881_v63  ;;  %v860_v51 = vmul.f32 %v1814_v7, %v845_v48  ;;  %v861_v52 = vmul.f32 %v1816_v32, %v845_v48  ;;  %v891_v7 = vpack.c.bf16 %v855_v59, %v854_v26  ;;  %v1017_v32 = vpop.permute.xlu0 %1016 }
 0x2e9   :  { %v885_v49 = vmul.f32 %v1820_v22, %v883_v58  ;;  %v1009_v22 = vpop.permute.xlu2 %1008 }
 0x2ea   :  { %v894_v39 = vpack.c.bf16 %v861_v52, %v860_v51 }
 0x2eb   :  { %v1060_v54 = vpack.c.bf16 %v885_v49, %v885_v49 }
 0x2ed   :  { %1272 = vmatmul.msk.bf16.vlgmr.msra.gmra.mxu3 %vm548_vm3, %v1060_v54  ;;  %v1007_v5 = vpop.permute.xlu1 %1006  ;;  %v1361_v54 = vld [vmem:[%s1891_s10] sm:$0xf]  ;;  %s1138_s10 = sshll.u32 %s1389_s24, 4  ;;  %s1139_s10 = int_to_ptr.vmem [resolvable:$true] %s1138_s10 }
 0x2ee   :  { %1265 = vmatmul.msk.bf16.gmra.mxu0 %vm548_vm3, %v888_v30 }
 0x2f0   :  { %v1019_v60 = vpop.permute.xlu0 %1018 }
 0x2f1   :  { %v1011_v61 = vpop.permute.xlu2 %1010 }
 0x2f5   :  { %v997_v11 = vpop.permute.xlu1 %996 }
 0x2f8   :  { %v1005_v62 = vpop.permute.xlu0 %1004 }
 0x2f9   :  { %v1001_v46 = vpop.permute.xlu2 %1000 }
 0x2fd   :  { %v995_v14 = vpop.permute.xlu1 %994 }
 0x2fe   :  { %1266 = vmatmul.msk.bf16.gmra.mxu0 %vm548_vm3, %v889_v25 }
 0x300   :  { %v1003_v1 = vpop.permute.xlu0 %1002 }
 0x301   :  { %v999_v3 = vpop.permute.xlu2 %998 }
 0x305   :  { %v1079_v26 = vpop.permute.xlu1 %1078 }
 0x308   :  { %v993_v43 = vpop.permute.xlu0 %992 }
 0x309   :  { %v989_v37 = vpop.permute.xlu2 %988 }
 0x30e   :  { %1267 = vmatmul.msk.bf16.gmra.mxu0 %vm548_vm3, %v890_v50 }
 0x310   :  { %v991_v6 = vpop.permute.xlu0 %990 }
 0x31e   :  { %1268 = vmatmul.msk.bf16.gmra.mxu0 %vm548_vm3, %v891_v7 }
 0x32e   :  { %1269 = vmatmul.msk.bf16.gmra.mxu0 %vm548_vm3, %v892_v55  ;;  %v1305_v55 = vld [vmem:[%s1887_s6 + $0x8] sm:$0xff] }
 0x32f   :  { %1125 = vmatpush.bf16.msra.mxu2 %v1305_v55 }
 0x333   :  { %1126 = vmatpush.bf16.msra.mxu2 %v1304_v20 }
 0x33e   :  { %1270 = vmatmul.msk.bf16.gmra.mxu0 %vm548_vm3, %v893_v56 }
 0x34e   :  { %1271 = vmatmul.msk.bf16.gmra.mxu0 %vm548_vm3, %v894_v39 }
 0x35b   :  { %v932_v4 = vpop.f32.mrf.mxu0 }
 0x35c   :  { %v1036_v27 = vmul.f32 %v989_v37, %v932_v4 }
 0x363   :  { %v934_v8 = vpop.f32.mrf.mxu0 }
 0x364   :  { %v1037_v41 = vmul.f32 %v991_v6, %v934_v8 }
 0x366   :  { %v1052_v9 = vpack.c.bf16 %v1037_v41, %v1036_v27 }
 0x36b   :  { %v937_v12 = vpop.f32.mrf.mxu0 }
 0x36c   :  { %v1038_v16 = vmul.f32 %v993_v43, %v937_v12 }
 0x370   :  { %v1073_v13 = vpop.f32.mrf.mxu3 }
 0x371   :  { %v1081_v59 = vmul.f32 %v1079_v26, %v1073_v13 }
 0x373   :  { %v939_v44 = vpop.f32.mrf.mxu0 }
 0x374   :  { %v1039_v31 = vmul.f32 %v995_v14, %v939_v44 }
 0x376   :  { %v1053_v36 = vpack.c.bf16 %v1039_v31, %v1038_v16 }
 0x378   :  { %v1075_v17 = vpop.f32.mrf.mxu3 }
 0x37b   :  { %v942_v19 = vpop.f32.mrf.mxu0 }
 0x37c   :  { %v1040_v15 = vmul.f32 %v997_v11, %v942_v19 }
 0x383   :  { %v944_v23 = vpop.f32.mrf.mxu0 }
 0x384   :  { %v1041_v28 = vmul.f32 %v999_v3, %v944_v23 }
 0x386   :  { %v1054_v29 = vpack.c.bf16 %v1041_v28, %v1040_v15 }
 0x38b   :  { %v947_v35 = vpop.f32.mrf.mxu0 }
 0x38c   :  { %v1042_v30 = vmul.f32 %v1001_v46, %v947_v35 }
 0x393   :  { %v949_v2 = vpop.f32.mrf.mxu0 }
 0x394   :  { %v1043_v10 = vmul.f32 %v1003_v1, %v949_v2 }
 0x396   :  { %v1055_v25 = vpack.c.bf16 %v1043_v10, %v1042_v30 }
 0x39b   :  { %v952_v42 = vpop.f32.mrf.mxu0 }
 0x39c   :  { %v1044_v49 = vmul.f32 %v1005_v62, %v952_v42 }
 0x3a3   :  { %v954_v63 = vpop.f32.mrf.mxu0 }
 0x3a4   :  { %v1045_v51 = vmul.f32 %v1007_v5, %v954_v63 }
 0x3a6   :  { %v1056_v39 = vpack.c.bf16 %v1045_v51, %v1044_v49 }
 0x3ab   :  { %v957_v33 = vpop.f32.mrf.mxu0 }
 0x3ac   :  { %v1046_v58 = vmul.f32 %v1009_v22, %v957_v33 }
 0x3b3   :  { %v959_v24 = vpop.f32.mrf.mxu0 }
 0x3b4   :  { %v1047_v40 = vmul.f32 %v1011_v61, %v959_v24  ;;  %v1310_v61 = vld [vmem:[%s1888_s7] ss:$0 sm:$0xff] }
 0x3b6   :  { %v1057_v52 = vpack.c.bf16 %v1047_v40, %v1046_v58 }
 0x3bb   :  { %v962_v45 = vpop.f32.mrf.mxu0 }
 0x3bc   :  { %v1048_v56 = vmul.f32 %v1013_v0, %v962_v45 }
 0x3c3   :  { %v964_v57 = vpop.f32.mrf.mxu0 }
 0x3c4   :  { %v1049_v50 = vmul.f32 %v1015_v34, %v964_v57 }
 0x3c6   :  { %v1058_v48 = vpack.c.bf16 %v1049_v50, %v1048_v56 }
 0x3cb   :  { %v967_v18 = vpop.f32.mrf.mxu0 }
 0x3cc   :  { %v1050_v47 = vmul.f32 %v1017_v32, %v967_v18 }
 0x3d3   :  { %v969_v21 = vpop.f32.mrf.mxu0 }
 0x3d4   :  { %v1051_v38 = vmul.f32 %v1019_v60, %v969_v21 }
 0x3d6   :  { %v1059_v53 = vpack.c.bf16 %v1051_v38, %v1050_v47 }
 0x3d8   :  { %1082 = vmatpush.bf16.msra.mxu1 %v1059_v53 }
 0x3dc   :  { %1083 = vmatpush.bf16.msra.mxu1 %v1058_v48 }
 0x3e0   :  { %1084 = vmatpush.bf16.msra.mxu1 %v1057_v52 }
 0x3e4   :  { %1085 = vmatpush.bf16.msra.mxu1 %v1056_v39 }
 0x3e8   :  { %1086 = vmatpush.bf16.msra.mxu1 %v1055_v25 }
 0x3ec   :  { %1087 = vmatpush.bf16.msra.mxu1 %v1054_v29 }
 0x3f0   :  { %1088 = vmatpush.bf16.msra.mxu1 %v1053_v36 }
 0x3f4   :  { %1089 = vmatpush.bf16.msra.mxu1 %v1052_v9 }
 0x3f7   :  { %1090 = vmatmul.bf16.vlgmr.msra.gmra.mxu1 %v1361_v54 }
 0x474   :  { %v1091_v7 = vpop.f32.mrf.mxu1 }
 0x475   :  { %v1092_v32 = vadd.f32 %v1091_v7, %v1081_v59 }
 0x477   :  { %v1095_v22 = vpack.c.bf16 %v1092_v32, %v1092_v32 }
 0x479   :  { %1281 = vmatmul.msk.bf16.vlgmr.msra.gmra.mxu2 %vm147_vm0, %v1095_v22 }
 0x47c   :  { %v1093_v60 = vpop.f32.mrf.mxu1 }
 0x4fc   :  { %v1128_v62 = vpop.f32.mrf.mxu2 }
 0x4fd   :  { %v1129_v0 = vadd.f32 %v1310_v61, %v1128_v62 }
 0x4ff   :  { %1132 = vst [vmem:[#allocation2] sm:$0xff] %v1129_v0 }
 0x500   :  { %1143 = dma.vmem_to_hbm [thread:$0]  %s1139_s10, 128, %s1141_s26, [#allocation3]  }
 0x504   :  { %v1130_v46 = vpop.f32.mrf.mxu2 }
 0x505   :  { %1386 = dma.done.wait [#allocation3], 128  }
 0x506   :  { %1387 = vsyncadd [#allocation3], 4294967168 }
 0x507   :  { %1148 = vsyncpa [#allocation3], 1 }

</bundles_post_ra>
